<compile_context>
chip_gen: v7x
topology: tpu7x:2x2x1
jax: 0.10.0
libtpu: 0.0.40
codegen_flags: <defaults>
</compile_context>

<pallas_src>
import functools
from typing import NamedTuple, Tuple

import jax
import jax.numpy as jnp
from jax.experimental import pallas as pl
from jax.experimental.pallas import tpu as pltpu

_LANE = 128


def _round_up(n, m):
    return ((n + m - 1) // m) * m


def _cdiv(a, b):
    return -(-a // b)


# -----------------------------------------------------------------------------
# Kernel
# -----------------------------------------------------------------------------
def _autoencoder_kernel(x_ref,
                        w1_ref, b1_ref,
                        w2_ref, b2_ref,
                        w3_ref, b3_ref,
                        w4_ref, b4_ref,
                        enc_ref, dec_ref):
    """Fused encoder+decoder hot path: 4 MXU matmuls + 2 ReLUs + bias adds.

    With block-diagonal (lane-packed) weights the refs are:
      x   (bb, 128)                 -- 8 batch rows folded per 128-lane row
      w1  (128, 512)   b1 (1, 512)
      w2  (512, 256)   b2 (1, 256)
      w3  (256, 512)   b3 (1, 512)
      w4  (512, 128)   b4 (1, 128)
      enc (bb, 256)    dec (bb, 128)  -- byte-identical views of (batch,32)/(batch,16)
    """
    wdt = w1_ref.dtype                       # streaming dtype of x / weights (f32 or bf16)
    x = x_ref[...]

    # ---- encoder ----
    h1 = jnp.dot(x, w1_ref[...], preferred_element_type=jnp.float32) + b1_ref[...]
    h1 = jnp.maximum(h1, 0.0)                # ReLU on the f32 accumulator (VPU)
    enc = jnp.dot(h1.astype(wdt), w2_ref[...],
                  preferred_element_type=jnp.float32) + b2_ref[...]

    # ---- decoder ----
    # NOTE: the decoder consumes enc cast to the streaming dtype (bf16 when enabled),
    # while the stored `encoded` output is the f32 accumulator cast to out_dtype; this
    # mirrors the pure-JAX reference precision policy exactly.
    h2 = jnp.dot(enc.astype(wdt), w3_ref[...],
                 preferred_element_type=jnp.float32) + b3_ref[...]
    h2 = jnp.maximum(h2, 0.0)
    dec = jnp.dot(h2.astype(wdt), w4_ref[...],
                  preferred_element_type=jnp.float32) + b4_ref[...]

    # Lane-dense, unmasked stores (shapes already match the refs -- no in-kernel relayout).
    enc_ref[...] = enc.astype(enc_ref.dtype)
    dec_ref[...] = dec.astype(dec_ref.dtype)


# -----------------------------------------------------------------------------
# pallas_call wrapper
# -----------------------------------------------------------------------------
@functools.partial(jax.jit, static_argnames=("row_pack", "block_rows", "out_dtype"))
def _forward_impl(x, weights, *, row_pack, block_rows, out_dtype):
    w1, b1, w2, b2, w3, b3, w4, b4 = weights
    batch, input_dim = x.shape
    n_enc = w2.shape[1]                      # packed enc width  = row_pack * bottleneck_dim
    n_dec = w4.shape[1]                      # packed dec width  = row_pack * input_dim
    bottleneck_dim = n_enc // row_pack

    # Stream x in the same dtype as the (pre-cast) weights.
    x = x.astype(w1.dtype)

    # Pad the batch so the packed-row count divides evenly into block_rows tiles.
    # Padding rows are zeros and get sliced off below (no reliance on OOB masking).
    total_rows = _round_up(_cdiv(batch, row_pack), block_rows)
    padded_batch = total_rows * row_pack
    if padded_batch != batch:
        x = jnp.pad(x, ((0, padded_batch - batch), (0, 0)))
    x2d = x.reshape(total_rows, row_pack * input_dim)       # free row-major lane packing

    grid = (total_rows // block_rows,)

    # Constant block index -> weights/biases stay VMEM-resident across grid steps.
    def resident(a):
        return pl.BlockSpec(a.shape, lambda i: (0, 0))

    out_bytes = jnp.dtype(out_dtype).itemsize
    flops = 2 * total_rows * sum(int(w.shape[0]) * int(w.shape[1])
                                 for w in (w1, w2, w3, w4))
    bytes_accessed = (int(x2d.size) * x2d.dtype.itemsize
                      + total_rows * (int(n_enc) + int(n_dec)) * out_bytes
                      + sum(int(p.size) * p.dtype.itemsize for p in weights))

    enc2d, dec2d = pl.pallas_call(
        _autoencoder_kernel,
        out_shape=(jax.ShapeDtypeStruct((total_rows, n_enc), out_dtype),
                   jax.ShapeDtypeStruct((total_rows, n_dec), out_dtype)),
        grid_spec=pltpu.PrefetchScalarGridSpec(
            num_scalar_prefetch=0,
            grid=grid,
            in_specs=[
                pl.BlockSpec((block_rows, row_pack * input_dim), lambda i: (i, 0)),  # x tile
                resident(w1), resident(b1),                                          # enc L1
                resident(w2), resident(b2),                                          # enc L2
                resident(w3), resident(b3),                                          # dec L1
                resident(w4), resident(b4),                                          # dec L2
            ],
            out_specs=[
                pl.BlockSpec((block_rows, n_enc), lambda i: (i, 0)),
                pl.BlockSpec((block_rows, n_dec), lambda i: (i, 0)),
            ],
        ),
        compiler_params=pltpu.CompilerParams(
            dimension_semantics=("parallel",)),              # batch axis -> megacore on v7x
        cost_estimate=pl.CostEstimate(flops=flops, transcendentals=0,
                                      bytes_accessed=bytes_accessed),
    )(x2d, w1, b1, w2, b2, w3, b3, w4, b4)

    enc = enc2d.reshape(padded_batch, bottleneck_dim)[:batch]
    dec = dec2d.reshape(padded_batch, input_dim)[:batch]
    return enc, dec


# -----------------------------------------------------------------------------
# Host-side helpers
# -----------------------------------------------------------------------------
@functools.lru_cache(maxsize=1)
def _num_tensorcores_per_chip():
    """1 TensorCore on v2-v6e; 2 on v7x-class chips (where 'parallel' shards the grid)."""
    try:
        kind = jax.devices()[0].device_kind.lower()
    except Exception:
        return 1
    return 2 if "v7" in kind else 1


def _choose_block_rows(total_rows, requested_rows, num_cores):
    """Rows here are *packed* rows (one packed row = row_pack batch rows)."""
    bb = max(8, min(requested_rows, total_rows))
    # Only split the grid when there is more than one TensorCore to feed (v7x).  On
    # single-TC v5e/v6e an extra grid step is pure per-step pipeline overhead.
    if num_cores > 1 and total_rows >= 8 * num_cores:
        bb = min(bb, _round_up(_cdiv(total_rows, num_cores), 8))
    if bb >= total_rows:
        return total_rows                    # single full-extent block
    return max(8, (bb // 8) * 8)             # sublane-aligned multi-step block


class PreparedParams(NamedTuple):
    weights: Tuple[jax.Array, ...]           # (w1,b1,...,w4,b4) block-diag packed & pre-cast
    row_pack: int
    input_dim: int
    bottleneck_dim: int


def prepare_params(params, *, compute_dtype=jnp.bfloat16):
    """Pack + cast the weights ONCE (block-diagonal lane packing; bf16 streaming default).

    params = (w1, b1, w2, b2, w3, b3, w4, b4) with weights stored as
    (in_features, out_features) and biases as (1, out_features).  Weights are cast to
    compute_dtype (biases stay f32 so the bias add happens on the f32 accumulator);
    pass compute_dtype=None for an exact f32 path.
    """
    w1, b1, w2, b2, w3, b3, w4, b4 = params
    input_dim = int(w1.shape[0])
    bottleneck_dim = int(w2.shape[1])
    row_pack = _LANE // input_dim if _LANE % input_dim == 0 else 1
    wdt = compute_dtype if compute_dtype is not None else w1.dtype

    def pack_w(w):
        if row_pack > 1:
            w = jnp.kron(jnp.eye(row_pack, dtype=w.dtype), w)   # block-diagonal replicas
        return w.astype(wdt)

    def pack_b(b):
        return jnp.tile(b, (1, row_pack)) if row_pack > 1 else b

    weights = (pack_w(w1), pack_b(b1), pack_w(w2), pack_b(b2),
               pack_w(w3), pack_b(b3), pack_w(w4), pack_b(b4))
    weights = jax.block_until_ready(weights)                    # materialize once, up front
    return PreparedParams(weights, row_pack, input_dim, bottleneck_dim)


def neural_storage_forward(x, prepared, *, block_batch=4096, out_dtype=jnp.bfloat16):
    """Fused autoencoder forward; returns (encoded, decoded) like NeuralStorage.forward.

    block_batch: max batch rows per grid step.  VMEM footprint is tiny (<6 MB at 4096
    rows), so block sizing is driven by per-step overhead amortization and v7x
    megacore splitting, not memory fit.
    out_dtype: storage dtype of encoded/decoded (bf16 halves the dominant writeback
    traffic; pass jnp.float32 for f32 outputs).
    """
    if not isinstance(prepared, PreparedParams):
        prepared = prepare_params(prepared)
    batch = x.shape[0]
    rp = prepared.row_pack
    total_rows = _cdiv(batch, rp)
    requested_rows = max(1, block_batch // rp)
    block_rows = _choose_block_rows(total_rows, requested_rows, _num_tensorcores_per_chip())
    return _forward_impl(x, prepared.weights, row_pack=rp,
                         block_rows=block_rows, out_dtype=out_dtype)


def init_params(key, input_dim=16, hidden_dim=64, bottleneck_dim=32):
    """PyTorch nn.Linear-style init: U(-1/sqrt(fan_in), 1/sqrt(fan_in)).

    Weights stored as (in_features, out_features) (transposed vs. PyTorch's (out, in))
    so the kernel computes x @ W + b directly.
    """
    dims = [(input_dim, hidden_dim), (hidden_dim, bottleneck_dim),
            (bottleneck_dim, hidden_dim), (hidden_dim, input_dim)]
    params = []
    for fan_in, fan_out in dims:
        key, kw, kb = jax.random.split(key, 3)
        bound = 1.0 / float(jnp.sqrt(fan_in))
        w = jax.random.uniform(kw, (fan_in, fan_out), jnp.float32, -bound, bound)
        b = jax.random.uniform(kb, (1, fan_out), jnp.float32, -bound, bound)
        params += [w, b]
    return tuple(params)


def reference_forward(x, params, compute_dtype=None):
    """Pure-JAX reference mirroring the kernel's precision policy (f32 accumulation)."""
    w1, b1, w2, b2, w3, b3, w4, b4 = params
    if compute_dtype is not None:
        x = x.astype(compute_dtype)
        w1, w2, w3, w4 = (w.astype(compute_dtype) for w in (w1, w2, w3, w4))
    f32 = jnp.float32
    h1 = jnp.maximum(jnp.dot(x, w1, preferred_element_type=f32) + b1, 0.0)
    enc = jnp.dot(h1.astype(w2.dtype), w2, preferred_element_type=f32) + b2
    h2 = jnp.maximum(jnp.dot(enc.astype(w3.dtype), w3, preferred_element_type=f32) + b3, 0.0)
    dec = jnp.dot(h2.astype(w4.dtype), w4, preferred_element_type=f32) + b4
    return enc, dec


if __name__ == "__main__":
    key = jax.random.PRNGKey(0)
    key, kx1, kx2, kx3 = jax.random.split(key, 4)

    input_dim, hidden_dim, bottleneck_dim = 16, 64, 32
    params = init_params(key, input_dim, hidden_dim, bottleneck_dim)

    # Tolerances are loose enough to absorb XLA's default (reduced-precision) f32
    # matmul in the reference vs. the MXU path in the kernel; a real packing/layout
    # bug would produce O(1) errors and still fail these checks.
    TOL = dict(atol=5e-2, rtol=5e-2)

    # 1) Small-batch f32 path: single packed tile (1, 128), exact-f32 weights.
    prepared_f32 = prepare_params(params, compute_dtype=None)
    x_small = jax.random.normal(kx1, (8, input_dim), jnp.float32)
    enc, dec = neural_storage_forward(x_small, prepared_f32, out_dtype=jnp.float32)
    jax.block_until_ready((enc, dec))
    enc_ref, dec_ref = reference_forward(x_small, params)
    assert enc.shape == (8, bottleneck_dim) and dec.shape == (8, input_dim)
    assert jnp.allclose(enc, enc_ref, **TOL)
    assert jnp.allclose(dec, dec_ref, **TOL)

    # 2) Ragged batch (not a multiple of 8) + forced multi-step grid: exercises the
    #    zero-padding / slicing path of the lane-packed layout.
    x_rag = jax.random.normal(kx3, (203, input_dim), jnp.float32)
    enc_r, dec_r = neural_storage_forward(x_rag, prepared_f32, block_batch=64,
                                          out_dtype=jnp.float32)
    jax.block_until_ready((enc_r, dec_r))
    enc_rr, dec_rr = reference_forward(x_rag, params)
    assert enc_r.shape == (203, bottleneck_dim) and dec_r.shape == (203, input_dim)
    assert jnp.allclose(enc_r, enc_rr, **TOL)
    assert jnp.allclose(dec_r, dec_rr, **TOL)

    # 3) Default perf configuration: bf16 streaming weights/x, bf16 outputs, large
    #    block (single step on v5e/v6e, two parallel steps on v7x).
    prepared_bf16 = prepare_params(params, compute_dtype=jnp.bfloat16)
    x_large = jax.random.normal(kx2, (512, input_dim), jnp.float32)
    enc_b, dec_b = neural_storage_forward(x_large, prepared_bf16)
    jax.block_until_ready((enc_b, dec_b))
    enc_br, dec_br = reference_forward(x_large, params, compute_dtype=jnp.bfloat16)
    assert enc_b.shape == (512, bottleneck_dim) and dec_b.shape == (512, input_dim)
    assert enc_b.dtype == jnp.bfloat16 and dec_b.dtype == jnp.bfloat16
    assert jnp.allclose(enc_b.astype(jnp.float32), enc_br, **TOL)
    assert jnp.allclose(dec_b.astype(jnp.float32), dec_br, **TOL)

    print("KERNEL_OK")
</pallas_src>

<mosaic_0001>
module attributes {stable_mosaic.version = 11 : i64} {
  func.func @_autoencoder_kernel(%arg0: i32, %arg1: memref<1x128xf32, #tpu.memory_space<vmem>>, %arg2: memref<128x512xf32, #tpu.memory_space<vmem>>, %arg3: memref<1x512xf32, #tpu.memory_space<vmem>>, %arg4: memref<512x256xf32, #tpu.memory_space<vmem>>, %arg5: memref<1x256xf32, #tpu.memory_space<vmem>>, %arg6: memref<256x512xf32, #tpu.memory_space<vmem>>, %arg7: memref<1x512xf32, #tpu.memory_space<vmem>>, %arg8: memref<512x128xf32, #tpu.memory_space<vmem>>, %arg9: memref<1x128xf32, #tpu.memory_space<vmem>>, %arg10: memref<1x256xf32, #tpu.memory_space<vmem>>, %arg11: memref<1x128xf32, #tpu.memory_space<vmem>>) attributes {dimension_semantics = [#tpu.dimension_semantics<parallel>], iteration_bounds = array<i64: 1>, scalar_prefetch = 0 : i64, scratch_operands = 0 : i64, tpu.core_type = #tpu.core_type<tc>, window_params = [{transform_indices = @transform_0, window_bounds = array<i64: 1, 128>}, {pipeline_mode = #tpu.pipeline_mode<synchronous>, transform_indices = @transform_1, window_bounds = array<i64: 128, 512>}, {pipeline_mode = #tpu.pipeline_mode<synchronous>, transform_indices = @transform_2, window_bounds = array<i64: 1, 512>}, {pipeline_mode = #tpu.pipeline_mode<synchronous>, transform_indices = @transform_3, window_bounds = array<i64: 512, 256>}, {pipeline_mode = #tpu.pipeline_mode<synchronous>, transform_indices = @transform_4, window_bounds = array<i64: 1, 256>}, {pipeline_mode = #tpu.pipeline_mode<synchronous>, transform_indices = @transform_5, window_bounds = array<i64: 256, 512>}, {pipeline_mode = #tpu.pipeline_mode<synchronous>, transform_indices = @transform_6, window_bounds = array<i64: 1, 512>}, {pipeline_mode = #tpu.pipeline_mode<synchronous>, transform_indices = @transform_7, window_bounds = array<i64: 512, 128>}, {pipeline_mode = #tpu.pipeline_mode<synchronous>, transform_indices = @transform_8, window_bounds = array<i64: 1, 128>}, {transform_indices = @transform_9, window_bounds = array<i64: 1, 256>}, {transform_indices = @transform_10, window_bounds = array<i64: 1, 128>}]} {
    %c0 = arith.constant 0 : index
    %c0_0 = arith.constant 0 : index
    %0 = vector.load %arg1[%c0, %c0_0] : memref<1x128xf32, #tpu.memory_space<vmem>>, vector<1x128xf32>
    %c0_1 = arith.constant 0 : index
    %c0_2 = arith.constant 0 : index
    %1 = vector.load %arg2[%c0_1, %c0_2] : memref<128x512xf32, #tpu.memory_space<vmem>>, vector<128x512xf32>
    %cst = arith.constant dense<0.000000e+00> : vector<1x512xf32>
    %2 = tpu.matmul %0, %1, %cst {dimension_numbers = #tpu.dot_dimension_numbers<[1], [0], [0], [1], [0, 0, 1, 1], [], []>} : vector<1x128xf32>, vector<128x512xf32>, vector<1x512xf32> -> vector<1x512xf32>
    %c0_3 = arith.constant 0 : index
    %c0_4 = arith.constant 0 : index
    %3 = vector.load %arg3[%c0_3, %c0_4] : memref<1x512xf32, #tpu.memory_space<vmem>>, vector<1x512xf32>
    %4 = arith.addf %2, %3 : vector<1x512xf32>
    %cst_5 = arith.constant 0.000000e+00 : f32
    %5 = vector.broadcast %cst_5 : f32 to vector<1x512xf32>
    %6 = arith.maximumf %4, %5 : vector<1x512xf32>
    %c0_6 = arith.constant 0 : index
    %c0_7 = arith.constant 0 : index
    %7 = vector.load %arg4[%c0_6, %c0_7] : memref<512x256xf32, #tpu.memory_space<vmem>>, vector<512x256xf32>
    %cst_8 = arith.constant dense<0.000000e+00> : vector<1x256xf32>
    %8 = tpu.matmul %6, %7, %cst_8 {dimension_numbers = #tpu.dot_dimension_numbers<[1], [0], [0], [1], [0, 0, 1, 1], [], []>} : vector<1x512xf32>, vector<512x256xf32>, vector<1x256xf32> -> vector<1x256xf32>
    %c0_9 = arith.constant 0 : index
    %c0_10 = arith.constant 0 : index
    %9 = vector.load %arg5[%c0_9, %c0_10] : memref<1x256xf32, #tpu.memory_space<vmem>>, vector<1x256xf32>
    %10 = arith.addf %8, %9 : vector<1x256xf32>
    %c0_11 = arith.constant 0 : index
    %c0_12 = arith.constant 0 : index
    %11 = vector.load %arg6[%c0_11, %c0_12] : memref<256x512xf32, #tpu.memory_space<vmem>>, vector<256x512xf32>
    %cst_13 = arith.constant dense<0.000000e+00> : vector<1x512xf32>
    %12 = tpu.matmul %10, %11, %cst_13 {dimension_numbers = #tpu.dot_dimension_numbers<[1], [0], [0], [1], [0, 0, 1, 1], [], []>} : vector<1x256xf32>, vector<256x512xf32>, vector<1x512xf32> -> vector<1x512xf32>
    %c0_14 = arith.constant 0 : index
    %c0_15 = arith.constant 0 : index
    %13 = vector.load %arg7[%c0_14, %c0_15] : memref<1x512xf32, #tpu.memory_space<vmem>>, vector<1x512xf32>
    %14 = arith.addf %12, %13 : vector<1x512xf32>
    %cst_16 = arith.constant 0.000000e+00 : f32
    %15 = vector.broadcast %cst_16 : f32 to vector<1x512xf32>
    %16 = arith.maximumf %14, %15 : vector<1x512xf32>
    %c0_17 = arith.constant 0 : index
    %c0_18 = arith.constant 0 : index
    %17 = vector.load %arg8[%c0_17, %c0_18] : memref<512x128xf32, #tpu.memory_space<vmem>>, vector<512x128xf32>
    %cst_19 = arith.constant dense<0.000000e+00> : vector<1x128xf32>
    %18 = tpu.matmul %16, %17, %cst_19 {dimension_numbers = #tpu.dot_dimension_numbers<[1], [0], [0], [1], [0, 0, 1, 1], [], []>} : vector<1x512xf32>, vector<512x128xf32>, vector<1x128xf32> -> vector<1x128xf32>
    %c0_20 = arith.constant 0 : index
    %c0_21 = arith.constant 0 : index
    %19 = vector.load %arg9[%c0_20, %c0_21] : memref<1x128xf32, #tpu.memory_space<vmem>>, vector<1x128xf32>
    %20 = arith.addf %18, %19 : vector<1x128xf32>
    %c0_22 = arith.constant 0 : index
    %c0_23 = arith.constant 0 : index
    %21 = vector.load %arg10[%c0_22, %c0_23] : memref<1x256xf32, #tpu.memory_space<vmem>>, vector<1x256xf32>
    tpu.vector_store %arg10[%c0_22, %c0_23], %10 {strides = array<i32>} : memref<1x256xf32, #tpu.memory_space<vmem>>, vector<1x256xf32>,
    %c0_24 = arith.constant 0 : index
    %c0_25 = arith.constant 0 : index
    %22 = vector.load %arg11[%c0_24, %c0_25] : memref<1x128xf32, #tpu.memory_space<vmem>>, vector<1x128xf32>
    tpu.vector_store %arg11[%c0_24, %c0_25], %20 {strides = array<i32>} : memref<1x128xf32, #tpu.memory_space<vmem>>, vector<1x128xf32>,
    return
  }
  func.func @transform_0(%arg0: i32) -> (i32, i32) {
    %c0_i32 = arith.constant 0 : i32
    %c0_i32_0 = arith.constant 0 : i32
    return %arg0, %c0_i32 : i32, i32
  }
  func.func @transform_1(%arg0: i32) -> (i32, i32) {
    %c0_i32 = arith.constant 0 : i32
    %c0_i32_0 = arith.constant 0 : i32
    %c0_i32_1 = arith.constant 0 : i32
    return %c0_i32, %c0_i32_0 : i32, i32
  }
  func.func @transform_2(%arg0: i32) -> (i32, i32) {
    %c0_i32 = arith.constant 0 : i32
    %c0_i32_0 = arith.constant 0 : i32
    %c0_i32_1 = arith.constant 0 : i32
    return %c0_i32, %c0_i32_0 : i32, i32
  }
  func.func @transform_3(%arg0: i32) -> (i32, i32) {
    %c0_i32 = arith.constant 0 : i32
    %c0_i32_0 = arith.constant 0 : i32
    %c0_i32_1 = arith.constant 0 : i32
    return %c0_i32, %c0_i32_0 : i32, i32
  }
  func.func @transform_4(%arg0: i32) -> (i32, i32) {
    %c0_i32 = arith.constant 0 : i32
    %c0_i32_0 = arith.constant 0 : i32
    %c0_i32_1 = arith.constant 0 : i32
    return %c0_i32, %c0_i32_0 : i32, i32
  }
  func.func @transform_5(%arg0: i32) -> (i32, i32) {
    %c0_i32 = arith.constant 0 : i32
    %c0_i32_0 = arith.constant 0 : i32
    %c0_i32_1 = arith.constant 0 : i32
    return %c0_i32, %c0_i32_0 : i32, i32
  }
  func.func @transform_6(%arg0: i32) -> (i32, i32) {
    %c0_i32 = arith.constant 0 : i32
    %c0_i32_0 = arith.constant 0 : i32
    %c0_i32_1 = arith.constant 0 : i32
    return %c0_i32, %c0_i32_0 : i32, i32
  }
  func.func @transform_7(%arg0: i32) -> (i32, i32) {
    %c0_i32 = arith.constant 0 : i32
    %c0_i32_0 = arith.constant 0 : i32
    %c0_i32_1 = arith.constant 0 : i32
    return %c0_i32, %c0_i32_0 : i32, i32
  }
  func.func @transform_8(%arg0: i32) -> (i32, i32) {
    %c0_i32 = arith.constant 0 : i32
    %c0_i32_0 = arith.constant 0 : i32
    %c0_i32_1 = arith.constant 0 : i32
    return %c0_i32, %c0_i32_0 : i32, i32
  }
  func.func @transform_9(%arg0: i32) -> (i32, i32) {
    %c0_i32 = arith.constant 0 : i32
    %c0_i32_0 = arith.constant 0 : i32
    return %arg0, %c0_i32 : i32, i32
  }
  func.func @transform_10(%arg0: i32) -> (i32, i32) {
    %c0_i32 = arith.constant 0 : i32
    %c0_i32_0 = arith.constant 0 : i32
    return %arg0, %c0_i32 : i32, i32
  }
}

</mosaic_0001>

<bundles_post_ra>
// kernel: _forward_impl.1
= control target key start
LH: loop header
LB: loop body
LE: loop exit
PB: predicated region body
PF: predicated region fallthrough
CT: control target
= control target key end

     0   :  { %16 = vsyncpa [#allocation3], 0  ;;  %s1888_s0 = inlined_call_operand.vmem [shape: f32[1,128], index: 0, kind: input, shape index: {}]   ;;  %s1889_s1 = inlined_call_operand.hbm [shape: f32[128,512], index: 1, kind: input, shape index: {}]   ;;  %s1890_s2 = inlined_call_operand.vmem [shape: f32[1,512], index: 2, kind: input, shape index: {}]   ;;  %s1891_s3 = inlined_call_operand.hbm [shape: f32[512,256], index: 3, kind: input, shape index: {}]   ;;  %s1892_s4 = inlined_call_operand.vmem [shape: f32[1,256], index: 4, kind: input, shape index: {}]   ;;  %s1893_s5 = inlined_call_operand.hbm [shape: f32[256,512], index: 5, kind: input, shape index: {}]   ;;  %s1894_s6 = inlined_call_operand.vmem [shape: f32[1,512], index: 6, kind: input, shape index: {}]   ;;  %s1895_s7 = inlined_call_operand.hbm [shape: f32[512,128], index: 7, kind: input, shape index: {}]   ;;  %s1896_s8 = inlined_call_operand.vmem [shape: f32[1,128], index: 8, kind: input, shape index: {}]   ;;  %s1897_s9 = inlined_call_operand.vmem [shape: f32[1,256], index: 9, kind: output, shape index: {0}]   ;;  %s1898_s10 = inlined_call_operand.vmem [shape: f32[1,128], index: 10, kind: output, shape index: {1}]  }
   0x1   :  { %17 = vsyncpa [#allocation5], 0 }
   0x2   :  { %18 = vsyncpa [#allocation8], 0  ;;  %s1704_s13 = smov [#allocation4]   ;;  %s1610_s17 = scalar_lea.hbm %s1891_s3, 16384 }
   0x3   :  { %s40_s14 = sshll.u32 %s1704_s13, 4  ;;  %p1611_p0 = scmp.ne.s32.totalorder %s1891_s3, %s1610_s17  ;;  %s41_s14 = int_to_ptr.vmem [resolvable:$true] %s40_s14 }
   0x4   :  { %p1614_p1 = scmp.lt.u32.totalorder %s1610_s17, %s1891_s3 }
   0x6   :  { %p1616_p2 = pnand %p1614_p1, %p1611_p0 }
   0x8   :  { %1619 = shalt.err (!%p1616_p2)
}
   0x9   :  { %s1620_s22 = scalar_lea.vmem %s41_s14, 16384  ;;  %p1625_p4 = scmp.lt.s32.totalorder %s41_s14, %s41_s14 }
   0xa   :  { %p1621_p3 = scmp.ne.s32.totalorder %s41_s14, %s1620_s22  ;;  %p1626_p5 = scmp.lt.s32.totalorder %s1620_s22, %s1620_s22 }
   0xc   :  { %p1627_p6 = por %p1626_p5, %p1625_p4 }
   0xe   :  { %p1628_p7 = pnand %p1627_p6, %p1621_p3 }
  0x10   :  { %1631 = shalt.err (!%p1628_p7)
}
  0x11   :  { %s1705_s23 = smov 256   ;;  %s1706_s24 = smov 16  }
  0x12   :  { %46 = dma.hbm_to_vmem [thread:$0]  %s1891_s3, 16384, %s41_s14, [#allocation5], %s1705_s23, %s1705_s23, %s1706_s24  }
  0x13   :  { %s1707_s27 = smov [#allocation2]   ;;  %s1632_s11 = scalar_lea.hbm %s1889_s1, 8192 }
  0x14   :  { %s26_s28 = sshll.u32 %s1707_s27, 4  ;;  %p1633_p8 = scmp.ne.s32.totalorder %s1889_s1, %s1632_s11  ;;  %s27_s28 = int_to_ptr.vmem [resolvable:$true] %s26_s28 }
  0x15   :  { %p1636_p9 = scmp.lt.u32.totalorder %s1632_s11, %s1889_s1 }
  0x17   :  { %p1638_p10 = pnand %p1636_p9, %p1633_p8 }
  0x19   :  { %1641 = shalt.err (!%p1638_p10)
}
  0x1a   :  { %s1642_s17 = scalar_lea.vmem %s27_s28, 8192  ;;  %p1647_p12 = scmp.lt.s32.totalorder %s27_s28, %s27_s28 }
  0x1b   :  { %p1643_p11 = scmp.ne.s32.totalorder %s27_s28, %s1642_s17  ;;  %p1648_p13 = scmp.lt.s32.totalorder %s1642_s17, %s1642_s17 }
  0x1d   :  { %p1649_p0 = por %p1648_p13, %p1647_p12 }
  0x1f   :  { %p1650_p1 = pnand %p1649_p0, %p1643_p11 }
  0x21   :  { %1653 = shalt.err (!%p1650_p1)
}
  0x22   :  { %s1708_s3 = smov 512   ;;  %s1709_s14 = smov 32  }
  0x23   :  { %32 = dma.hbm_to_vmem [thread:$0]  %s1889_s1, 8192, %s27_s28, [#allocation3], %s1708_s3, %s1708_s3, %s1709_s14  }
  0x24   :  { %s1710_s20 = smov [#allocation6]   ;;  %s1711_s22 = smov [#allocation7]  }
  0x25   :  { %s54_s21 = sshll.u32 %s1710_s20, 4  ;;  %s68_s23 = sshll.u32 %s1711_s22, 4  ;;  %s55_s21 = int_to_ptr.vmem [resolvable:$true] %s54_s21  ;;  %s1795_s23 = int_to_ptr.vmem [resolvable:$true] %s68_s23 }
  0x26   :  { %s1654_s26 = scalar_lea.hbm %s1893_s5, 16384 }
  0x27   :  { %p1655_p2 = scmp.ne.s32.totalorder %s1893_s5, %s1654_s26  ;;  %p1658_p3 = scmp.lt.u32.totalorder %s1654_s26, %s1893_s5 }
  0x29   :  { %p1660_p4 = pnand %p1658_p3, %p1655_p2 }
  0x2b   :  { %1663 = shalt.err (!%p1660_p4)
}
  0x2c   :  { %s1664_s1 = scalar_lea.vmem %s55_s21, 16384  ;;  %p1669_p6 = scmp.lt.s32.totalorder %s55_s21, %s55_s21 }
  0x2d   :  { %p1665_p5 = scmp.ne.s32.totalorder %s55_s21, %s1664_s1  ;;  %p1670_p7 = scmp.lt.s32.totalorder %s1664_s1, %s1664_s1 }
  0x2f   :  { %p1671_p8 = por %p1670_p7, %p1669_p6 }
  0x31   :  { %p1672_p9 = pnand %p1671_p8, %p1665_p5 }
  0x33   :  { %1675 = shalt.err (!%p1672_p9)
}
  0x34   :  { %60 = dma.hbm_to_vmem [thread:$0]  %s1893_s5, 16384, %s55_s21, [#allocation5], %s1708_s3, %s1708_s3, %s1709_s14  }
  0x35   :  { %s1676_s16 = scalar_lea.hbm %s1895_s7, 8192 }
  0x36   :  { %p1677_p10 = scmp.ne.s32.totalorder %s1895_s7, %s1676_s16  ;;  %p1680_p11 = scmp.lt.u32.totalorder %s1676_s16, %s1895_s7 }
  0x38   :  { %p1682_p12 = pnand %p1680_p11, %p1677_p10 }
  0x3a   :  { %1685 = shalt.err (!%p1682_p12)
}
  0x3b   :  { %s1686_s22 = scalar_lea.vmem %s1795_s23, 8192  ;;  %p1691_p0 = scmp.lt.s32.totalorder %s1795_s23, %s1795_s23 }
  0x3c   :  { %p1687_p13 = scmp.ne.s32.totalorder %s1795_s23, %s1686_s22  ;;  %p1692_p1 = scmp.lt.s32.totalorder %s1686_s22, %s1686_s22 }
  0x3e   :  { %p1693_p2 = por %p1692_p1, %p1691_p0 }
  0x40   :  { %p1694_p3 = pnand %p1693_p2, %p1687_p13 }
  0x42   :  { %1697 = shalt.err (!%p1694_p3)
}
  0x43   :  { %s1712_s5 = smov 128   ;;  %s1713_s3 = smov 8  }
  0x44   :  { %74 = dma.hbm_to_vmem [thread:$0]  %s1895_s7, 8192, %s1795_s23, [#allocation8], %s1712_s5, %s1712_s5, %s1713_s3  }
  0x45   :  { %1698 = dma.done.wait [#allocation3], 8192  }
  0x46   :  { %1699 = vsyncadd [#allocation3], 4294959104 }
  0x47   :  { %1700 = dma.done.wait [#allocation5], 32768  }
  0x48   :  { %1701 = vsyncadd [#allocation5], 4294934528 }
  0x49   :  { %1702 = dma.done.wait [#allocation8], 8192  }
  0x4a   :  { %1703 = vsyncadd [#allocation8], 4294959104  ;;  %v1714_v0 = vmov 0.0   ;;  %v91_v1 = vld [vmem:[#allocation2 + $0x8] sm:$0xff]  ;;  %v90_v3 = vld [vmem:[#allocation2] sm:$0xff] }
  0x4b   :  { %240 = vmatprep.mubr.f32.mxu0 %v1714_v0  ;;  %311 = vmatprep.mubr.f32.mxu1 %v1714_v0  ;;  %v95_v2 = vld [vmem:[#allocation2 + $0x28] sm:$0xff]  ;;  %v94_v5 = vld [vmem:[#allocation2 + $0x20] sm:$0xff]  ;;  %v93_v28 = vld [vmem:[#allocation2 + $0x18] sm:$0xff] }
  0x4c   :  { %v1210_v4 = vpack.c.bf16 %v95_v2, %v91_v1  ;;  %v99_v6 = vld [vmem:[#allocation2 + $0x48] sm:$0xff]  ;;  %v1212_v8 = vpack.c.bf16 %v94_v5, %v90_v3  ;;  %v98_v10 = vld [vmem:[#allocation2 + $0x40] sm:$0xff]  ;;  %v97_v29 = vld [vmem:[#allocation2 + $0x38] sm:$0xff] }
  0x4d   :  { %v103_v7 = vld [vmem:[#allocation2 + $0x68] sm:$0xff]  ;;  %v102_v11 = vld [vmem:[#allocation2 + $0x60] sm:$0xff]  ;;  %v92_v30 = vld [vmem:[#allocation2 + $0x10] sm:$0xff]  ;;  %v1242_v32 = vpack.c.bf16 %v97_v29, %v93_v28 }
  0x4e   :  { %v1214_v9 = vpack.c.bf16 %v103_v7, %v99_v6  ;;  %v107_v12 = vld [vmem:[#allocation2 + $0x88] sm:$0xff]  ;;  %1211 = vmatprep.subr.bf16.mxu0 %v1210_v4  ;;  %v1216_v14 = vpack.c.bf16 %v102_v11, %v98_v10  ;;  %v106_v16 = vld [vmem:[#allocation2 + $0x80] sm:$0xff]  ;;  %v96_v33 = vld [vmem:[#allocation2 + $0x30] sm:$0xff] }
  0x4f   :  { %v111_v13 = vld [vmem:[#allocation2 + $0xa8] sm:$0xff]  ;;  %1213 = vmatpush1.bf16.msra.mxu0 %v1212_v8  ;;  %v110_v17 = vld [vmem:[#allocation2 + $0xa0] sm:$0xff]  ;;  %v101_v34 = vld [vmem:[#allocation2 + $0x58] sm:$0xff]  ;;  %v1244_v37 = vpack.c.bf16 %v96_v33, %v92_v30  ;;  %1243 = vmatprep.subr.bf16.mxu1 %v1242_v32 }
  0x50   :  { %1215 = vmatprep.subr.bf16.mxu0 %v1214_v9  ;;  %v1218_v15 = vpack.c.bf16 %v111_v13, %v107_v12  ;;  %v115_v18 = vld [vmem:[#allocation2 + $0xc8] sm:$0xff]  ;;  %v1220_v20 = vpack.c.bf16 %v110_v17, %v106_v16  ;;  %v114_v22 = vld [vmem:[#allocation2 + $0xc0] sm:$0xff]  ;;  %v105_v35 = vld [vmem:[#allocation2 + $0x78] sm:$0xff] }
  0x51   :  { %v119_v19 = vld [vmem:[#allocation2 + $0xe8] sm:$0xff]  ;;  %v118_v23 = vld [vmem:[#allocation2 + $0xe0] sm:$0xff]  ;;  %v1246_v38 = vpack.c.bf16 %v105_v35, %v101_v34  ;;  %v100_v39 = vld [vmem:[#allocation2 + $0x50] sm:$0xff]  ;;  %1245 = vmatpush1.bf16.msra.mxu1 %v1244_v37 }
  0x52   :  { %v1222_v21 = vpack.c.bf16 %v119_v19, %v115_v18  ;;  %v123_v24 = vld [vmem:[#allocation2 + $0x108] sm:$0xff]  ;;  %v122_v26 = vld [vmem:[#allocation2 + $0x100] sm:$0xff]  ;;  %v1224_v31 = vpack.c.bf16 %v118_v23, %v114_v22  ;;  %v104_v40 = vld [vmem:[#allocation2 + $0x70] sm:$0xff] }
  0x53   :  { %1217 = vmatpush1.bf16.msra.mxu0 %v1216_v14  ;;  %v127_v25 = vld [vmem:[#allocation2 + $0x128] sm:$0xff]  ;;  %v126_v27 = vld [vmem:[#allocation2 + $0x120] sm:$0xff]  ;;  %v109_v41 = vld [vmem:[#allocation2 + $0x98] sm:$0xff]  ;;  %v1248_v45 = vpack.c.bf16 %v104_v40, %v100_v39  ;;  %1247 = vmatprep.subr.bf16.mxu1 %v1246_v38 }
  0x54   :  { %1219 = vmatprep.subr.bf16.mxu0 %v1218_v15  ;;  %v1226_v36 = vpack.c.bf16 %v127_v25, %v123_v24  ;;  %v131_v42 = vld [vmem:[#allocation2 + $0x148] sm:$0xff]  ;;  %v113_v44 = vld [vmem:[#allocation2 + $0xb8] sm:$0xff]  ;;  %v1228_v46 = vpack.c.bf16 %v126_v27, %v122_v26  ;;  %v130_v47 = vld [vmem:[#allocation2 + $0x140] sm:$0xff] }
  0x55   :  { %v135_v43 = vld [vmem:[#allocation2 + $0x168] sm:$0xff]  ;;  %v1250_v48 = vpack.c.bf16 %v113_v44, %v109_v41  ;;  %v108_v49 = vld [vmem:[#allocation2 + $0x90] sm:$0xff]  ;;  %v134_v52 = vld [vmem:[#allocation2 + $0x160] sm:$0xff]  ;;  %1249 = vmatpush1.bf16.msra.mxu1 %v1248_v45 }
  0x56   :  { %v112_v50 = vld [vmem:[#allocation2 + $0xb0] sm:$0xff]  ;;  %v1230_v51 = vpack.c.bf16 %v135_v43, %v131_v42  ;;  %v117_v53 = vld [vmem:[#allocation2 + $0xd8] sm:$0xff]  ;;  %v139_v55 = vld [vmem:[#allocation2 + $0x188] sm:$0xff]  ;;  %v1232_v58 = vpack.c.bf16 %v134_v52, %v130_v47 }
  0x57   :  { %1221 = vmatpush1.bf16.msra.mxu0 %v1220_v20  ;;  %v121_v54 = vld [vmem:[#allocation2 + $0xf8] sm:$0xff]  ;;  %v143_v56 = vld [vmem:[#allocation2 + $0x1a8] sm:$0xff]  ;;  %v1252_v57 = vpack.c.bf16 %v112_v50, %v108_v49  ;;  %v138_v59 = vld [vmem:[#allocation2 + $0x180] sm:$0xff]  ;;  %1251 = vmatprep.subr.bf16.mxu1 %v1250_v48 }
  0x58   :  { %1223 = vmatprep.subr.bf16.mxu0 %v1222_v21  ;;  %v1254_v60 = vpack.c.bf16 %v121_v54, %v117_v53  ;;  %v116_v61 = vld [vmem:[#allocation2 + $0xd0] sm:$0xff]  ;;  %v1234_v63 = vpack.c.bf16 %v143_v56, %v139_v55  ;;  %v142_v0 = vld [vmem:[#allocation2 + $0x1a0] sm:$0xff]  ;;  %v125_v1 = vld [vmem:[#allocation2 + $0x118] sm:$0xff] }
  0x59   :  { %v120_v62 = vld [vmem:[#allocation2 + $0xf0] sm:$0xff]  ;;  %v129_v2 = vld [vmem:[#allocation2 + $0x138] sm:$0xff]  ;;  %v147_v3 = vld [vmem:[#allocation2 + $0x1c8] sm:$0xff]  ;;  %1253 = vmatpush1.bf16.msra.mxu1 %v1252_v57  ;;  %v1236_v6 = vpack.c.bf16 %v142_v0, %v138_v59 }
  0x5a   :  { %v151_v4 = vld [vmem:[#allocation2 + $0x1e8] sm:$0xff]  ;;  %v1256_v5 = vpack.c.bf16 %v120_v62, %v116_v61  ;;  %v146_v7 = vld [vmem:[#allocation2 + $0x1c0] sm:$0xff]  ;;  %1255 = vmatprep.subr.bf16.mxu1 %v1254_v60  ;;  %v1258_v8 = vpack.c.bf16 %v129_v2, %v125_v1  ;;  %v124_v9 = vld [vmem:[#allocation2 + $0x110] sm:$0xff] }
  0x5b   :  { %1225 = vmatpush1.bf16.msra.mxu0 %v1224_v31  ;;  %v128_v10 = vld [vmem:[#allocation2 + $0x130] sm:$0xff]  ;;  %v1238_v11 = vpack.c.bf16 %v151_v4, %v147_v3  ;;  %v150_v12 = vld [vmem:[#allocation2 + $0x1e0] sm:$0xff]  ;;  %v133_v13 = vld [vmem:[#allocation2 + $0x158] sm:$0xff] }
  0x5c   :  { %1227 = vmatprep.subr.bf16.mxu0 %v1226_v36  ;;  %v137_v14 = vld [vmem:[#allocation2 + $0x178] sm:$0xff]  ;;  %v323_v15 = vld [vmem:[#allocation4 + $0x8] sm:$0xff]  ;;  %v1260_v17 = vpack.c.bf16 %v128_v10, %v124_v9  ;;  %v1240_v18 = vpack.c.bf16 %v150_v12, %v146_v7  ;;  %v132_v20 = vld [vmem:[#allocation2 + $0x150] sm:$0xff] }
  0x5d   :  { %v325_v16 = vld [vmem:[#allocation4 + $0x18] sm:$0xff]  ;;  %1257 = vmatpush1.bf16.msra.mxu1 %v1256_v5  ;;  %v1262_v19 = vpack.c.bf16 %v137_v14, %v133_v13  ;;  %v136_v21 = vld [vmem:[#allocation2 + $0x170] sm:$0xff]  ;;  %v322_v25 = vld [vmem:[#allocation4] sm:$0xff] }
  0x5e   :  { %1259 = vmatprep.subr.bf16.mxu1 %v1258_v8  ;;  %v141_v22 = vld [vmem:[#allocation2 + $0x198] sm:$0xff]  ;;  %v1274_v24 = vpack.c.bf16 %v325_v16, %v323_v15  ;;  %v324_v26 = vld [vmem:[#allocation4 + $0x10] sm:$0xff]  ;;  %v327_v27 = vld [vmem:[#allocation4 + $0x28] sm:$0xff]  ;;  %v1264_v30 = vpack.c.bf16 %v136_v21, %v132_v20 }
  0x5f   :  { %1229 = vmatpush1.bf16.msra.mxu0 %v1228_v46  ;;  %v145_v23 = vld [vmem:[#allocation2 + $0x1b8] sm:$0xff]  ;;  %v89_v29 = vld [vmem:[%s1888_s0] sm:$0x1]  ;;  %v140_v32 = vld [vmem:[#allocation2 + $0x190] sm:$0xff]  ;;  %v1276_v35 = vpack.c.bf16 %v324_v26, %v322_v25 }
  0x60   :  { %1231 = vmatprep.subr.bf16.mxu0 %v1230_v51  ;;  %v329_v28 = vld [vmem:[#allocation4 + $0x38] sm:$0xff]  ;;  %v1266_v31 = vpack.c.bf16 %v145_v23, %v141_v22  ;;  %v144_v33 = vld [vmem:[#allocation2 + $0x1b0] sm:$0xff]  ;;  %v326_v38 = vld [vmem:[#allocation4 + $0x20] sm:$0xff] }
  0x61   :  { %1261 = vmatpush1.bf16.msra.mxu1 %v1260_v17  ;;  %v149_v34 = vld [vmem:[#allocation2 + $0x1d8] sm:$0xff]  ;;  %v1278_v37 = vpack.c.bf16 %v329_v28, %v327_v27  ;;  %v328_v39 = vld [vmem:[#allocation4 + $0x30] sm:$0xff]  ;;  %v331_v40 = vld [vmem:[#allocation4 + $0x48] sm:$0xff]  ;;  %v1268_v42 = vpack.c.bf16 %v144_v33, %v140_v32 }
  0x62   :  { %1263 = vmatprep.subr.bf16.mxu1 %v1262_v19  ;;  %v153_v36 = vld [vmem:[#allocation2 + $0x1f8] sm:$0xff]  ;;  %v148_v44 = vld [vmem:[#allocation2 + $0x1d0] sm:$0xff]  ;;  %v1280_v46 = vpack.c.bf16 %v328_v39, %v326_v38  ;;  %v330_v48 = vld [vmem:[#allocation4 + $0x40] sm:$0xff] }
  0x63   :  { %1233 = vmatpush1.bf16.msra.mxu0 %v1232_v58  ;;  %v333_v41 = vld [vmem:[#allocation4 + $0x58] sm:$0xff]  ;;  %v1270_v43 = vpack.c.bf16 %v153_v36, %v149_v34  ;;  %v152_v45 = vld [vmem:[#allocation2 + $0x1f0] sm:$0xff]  ;;  %v335_v50 = vld [vmem:[#allocation4 + $0x68] sm:$0xff] }
  0x64   :  { %1235 = vmatprep.subr.bf16.mxu0 %v1234_v63  ;;  %v1282_v47 = vpack.c.bf16 %v333_v41, %v331_v40  ;;  %v332_v49 = vld [vmem:[#allocation4 + $0x50] sm:$0xff]  ;;  %v337_v51 = vld [vmem:[#allocation4 + $0x78] sm:$0xff]  ;;  %v1272_v52 = vpack.c.bf16 %v152_v45, %v148_v44  ;;  %v334_v55 = vld [vmem:[#allocation4 + $0x60] sm:$0xff] }
  0x65   :  { %1265 = vmatpush1.bf16.msra.mxu1 %v1264_v30  ;;  %v1284_v53 = vpack.c.bf16 %v332_v49, %v330_v48  ;;  %v1286_v54 = vpack.c.bf16 %v337_v51, %v335_v50  ;;  %v336_v56 = vld [vmem:[#allocation4 + $0x70] sm:$0xff]  ;;  %v339_v57 = vld [vmem:[#allocation4 + $0x88] sm:$0xff]  ;;  %v341_v58 = vld [vmem:[#allocation4 + $0x98] sm:$0xff] }
  0x66   :  { %1267 = vmatprep.subr.bf16.mxu1 %v1266_v31  ;;  %v1288_v59 = vpack.c.bf16 %v336_v56, %v334_v55  ;;  %v1290_v60 = vpack.c.bf16 %v341_v58, %v339_v57  ;;  %v338_v61 = vld [vmem:[#allocation4 + $0x80] sm:$0xff]  ;;  %v340_v62 = vld [vmem:[#allocation4 + $0x90] sm:$0xff]  ;;  %v343_v63 = vld [vmem:[#allocation4 + $0xa8] sm:$0xff] }
  0x67   :  { %1237 = vmatpush1.bf16.msra.mxu0 %v1236_v6  ;;  %v345_v0 = vld [vmem:[#allocation4 + $0xb8] sm:$0xff]  ;;  %v1292_v1 = vpack.c.bf16 %v340_v62, %v338_v61  ;;  %v342_v3 = vld [vmem:[#allocation4 + $0xa0] sm:$0xff]  ;;  %v344_v4 = vld [vmem:[#allocation4 + $0xb0] sm:$0xff] }
  0x68   :  { %1239 = vmatprep.subr.bf16.mxu0 %v1238_v11  ;;  %v1294_v2 = vpack.c.bf16 %v345_v0, %v343_v63  ;;  %v347_v5 = vld [vmem:[#allocation4 + $0xc8] sm:$0xff]  ;;  %v349_v6 = vld [vmem:[#allocation4 + $0xd8] sm:$0xff]  ;;  %v1296_v7 = vpack.c.bf16 %v344_v4, %v342_v3  ;;  %v346_v9 = vld [vmem:[#allocation4 + $0xc0] sm:$0xff] }
  0x69   :  { %1269 = vmatpush1.bf16.msra.mxu1 %v1268_v42  ;;  %v1298_v8 = vpack.c.bf16 %v349_v6, %v347_v5  ;;  %v348_v10 = vld [vmem:[#allocation4 + $0xd0] sm:$0xff]  ;;  %v351_v11 = vld [vmem:[#allocation4 + $0xe8] sm:$0xff]  ;;  %v353_v12 = vld [vmem:[#allocation4 + $0xf8] sm:$0xff] }
  0x6a   :  { %1271 = vmatprep.subr.bf16.mxu1 %v1270_v43  ;;  %v1300_v13 = vpack.c.bf16 %v348_v10, %v346_v9  ;;  %v1302_v14 = vpack.c.bf16 %v353_v12, %v351_v11  ;;  %v350_v15 = vld [vmem:[#allocation4 + $0xe0] sm:$0xff]  ;;  %v352_v16 = vld [vmem:[#allocation4 + $0xf0] sm:$0xff]  ;;  %v355_v17 = vld [vmem:[#allocation4 + $0x108] sm:$0xff] }
  0x6b   :  { %1241 = vmatpush1.bf16.msra.mxu0 %v1240_v18  ;;  %v357_v18 = vld [vmem:[#allocation4 + $0x118] sm:$0xff]  ;;  %v1304_v19 = vpack.c.bf16 %v352_v16, %v350_v15  ;;  %v354_v21 = vld [vmem:[#allocation4 + $0x100] sm:$0xff]  ;;  %v356_v22 = vld [vmem:[#allocation4 + $0x110] sm:$0xff] }
  0x6c   :  { %1275 = vmatprep.subr.bf16.mxu0 %v1274_v24  ;;  %v1306_v20 = vpack.c.bf16 %v357_v18, %v355_v17  ;;  %v359_v23 = vld [vmem:[#allocation4 + $0x128] sm:$0xff]  ;;  %v361_v24 = vld [vmem:[#allocation4 + $0x138] sm:$0xff]  ;;  %v1308_v25 = vpack.c.bf16 %v356_v22, %v354_v21  ;;  %v358_v27 = vld [vmem:[#allocation4 + $0x120] sm:$0xff] }
  0x6d   :  { %1273 = vmatpush1.bf16.msra.mxu1 %v1272_v52  ;;  %v1310_v26 = vpack.c.bf16 %v361_v24, %v359_v23  ;;  %v360_v28 = vld [vmem:[#allocation4 + $0x130] sm:$0xff]  ;;  %v365_v30 = vld [vmem:[#allocation4 + $0x158] sm:$0xff]  ;;  %v362_v33 = vld [vmem:[#allocation4 + $0x140] sm:$0xff] }
  0x6e   :  { %241 = vmatmul.mubr.f32.vlgmr.msra.gmra.mrb[0].mxu0 %v89_v29  ;;  %v1312_v31 = vpack.c.bf16 %v360_v28, %v358_v27  ;;  %v364_v34 = vld [vmem:[#allocation4 + $0x150] sm:$0xff]  ;;  %v369_v36 = vld [vmem:[#allocation4 + $0x178] sm:$0xff]  ;;  %v366_v39 = vld [vmem:[#allocation4 + $0x160] sm:$0xff] }
  0x6f   :  { %1277 = vmatpush1.bf16.msra.mxu0 %v1276_v35  ;;  %v367_v35 = vld [vmem:[#allocation4 + $0x168] sm:$0xff]  ;;  %v368_v40 = vld [vmem:[#allocation4 + $0x170] sm:$0xff]  ;;  %v373_v42 = vld [vmem:[#allocation4 + $0x198] sm:$0xff] }
  0x70   :  { %1279 = vmatprep.subr.bf16.mxu0 %v1278_v37  ;;  %312 = vmatmul.mubr.f32.vlgmr.msra.gmra.mrb[0].mxu1 %v89_v29  ;;  %v363_v29 = vld [vmem:[#allocation4 + $0x148] sm:$0xff]  ;;  %v1316_v37 = vpack.c.bf16 %v364_v34, %v362_v33  ;;  %v1318_v38 = vpack.c.bf16 %v369_v36, %v367_v35  ;;  %v1320_v43 = vpack.c.bf16 %v368_v40, %v366_v39  ;;  %v370_v45 = vld [vmem:[#allocation4 + $0x180] sm:$0xff]  ;;  %v377_v48 = vld [vmem:[#allocation4 + $0x1b8] sm:$0xff] }
  0x71   :  { %v1314_v32 = vpack.c.bf16 %v365_v30, %v363_v29  ;;  %v371_v41 = vld [vmem:[#allocation4 + $0x188] sm:$0xff]  ;;  %v374_v51 = vld [vmem:[#allocation4 + $0x1a0] sm:$0xff]  ;;  %v376_v52 = vld [vmem:[#allocation4 + $0x1b0] sm:$0xff] }
  0x72   :  { %v1322_v44 = vpack.c.bf16 %v373_v42, %v371_v41  ;;  %v1328_v55 = vpack.c.bf16 %v376_v52, %v374_v51  ;;  %v378_v57 = vld [vmem:[#allocation4 + $0x1c0] sm:$0xff]  ;;  %v380_v58 = vld [vmem:[#allocation4 + $0x1d0] sm:$0xff]  ;;  %v385_v61 = vld [vmem:[#allocation4 + $0x1f8] sm:$0xff] }
  0x73   :  { %1281 = vmatpush1.bf16.msra.mxu0 %v1280_v46  ;;  %v372_v46 = vld [vmem:[#allocation4 + $0x190] sm:$0xff]  ;;  %v382_v63 = vld [vmem:[#allocation4 + $0x1e0] sm:$0xff]  ;;  %v389_v3 = vld [vmem:[#allocation4 + $0x218] sm:$0xff] }
  0x74   :  { %1283 = vmatprep.subr.bf16.mxu0 %v1282_v47  ;;  %v375_v47 = vld [vmem:[#allocation4 + $0x1a8] sm:$0xff]  ;;  %v1324_v49 = vpack.c.bf16 %v372_v46, %v370_v45  ;;  %v384_v0 = vld [vmem:[#allocation4 + $0x1f0] sm:$0xff]  ;;  %v608_v9 = vld [vmem:[#allocation6 + $0x20] sm:$0xff] }
  0x75   :  { %v1326_v50 = vpack.c.bf16 %v377_v48, %v375_v47  ;;  %v605_v5 = vld [vmem:[#allocation6 + $0x8] sm:$0xff]  ;;  %v616_v15 = vld [vmem:[#allocation6 + $0x60] sm:$0xff] }
  0x76   :  { %v609_v6 = vld [vmem:[#allocation6 + $0x28] sm:$0xff]  ;;  %v624_v21 = vld [vmem:[#allocation6 + $0xa0] sm:$0xff] }
  0x77   :  { %1285 = vmatpush1.bf16.msra.mxu0 %v1284_v53  ;;  %v379_v53 = vld [vmem:[#allocation4 + $0x1c8] sm:$0xff]  ;;  %v632_v27 = vld [vmem:[#allocation6 + $0xe0] sm:$0xff] }
  0x78   :  { %1287 = vmatprep.subr.bf16.mxu0 %v1286_v54  ;;  %v381_v54 = vld [vmem:[#allocation4 + $0x1d8] sm:$0xff]  ;;  %v613_v10 = vld [vmem:[#allocation6 + $0x48] sm:$0xff]  ;;  %v640_v33 = vld [vmem:[#allocation6 + $0x120] sm:$0xff] }
  0x79   :  { %v1330_v56 = vpack.c.bf16 %v381_v54, %v379_v53  ;;  %v617_v11 = vld [vmem:[#allocation6 + $0x68] sm:$0xff]  ;;  %v648_v39 = vld [vmem:[#allocation6 + $0x160] sm:$0xff] }
  0x7a   :  { %v621_v16 = vld [vmem:[#allocation6 + $0x88] sm:$0xff]  ;;  %v656_v45 = vld [vmem:[#allocation6 + $0x1a0] sm:$0xff] }
  0x7b   :  { %1289 = vmatpush1.bf16.msra.mxu0 %v1288_v59  ;;  %v1332_v59 = vpack.c.bf16 %v380_v58, %v378_v57  ;;  %v625_v17 = vld [vmem:[#allocation6 + $0xa8] sm:$0xff]  ;;  %v664_v51 = vld [vmem:[#allocation6 + $0x1e0] sm:$0xff] }
  0x7c   :  { %1291 = vmatprep.subr.bf16.mxu0 %v1290_v60  ;;  %v383_v60 = vld [vmem:[#allocation4 + $0x1e8] sm:$0xff]  ;;  %v672_v57 = vld [vmem:[#allocation6 + $0x220] sm:$0xff] }
  0x7d   :  { %v1334_v62 = vpack.c.bf16 %v385_v61, %v383_v60  ;;  %v629_v22 = vld [vmem:[#allocation6 + $0xc8] sm:$0xff] }
  0x7e   :  { %v633_v23 = vld [vmem:[#allocation6 + $0xe8] sm:$0xff] }
  0x7f   :  { %1293 = vmatpush1.bf16.msra.mxu0 %v1292_v1  ;;  %v1336_v1 = vpack.c.bf16 %v384_v0, %v382_v63  ;;  %v637_v28 = vld [vmem:[#allocation6 + $0x108] sm:$0xff]  ;;  %v680_v63 = vld [vmem:[#allocation6 + $0x260] sm:$0xff] }
  0x80   :  { %1295 = vmatprep.subr.bf16.mxu0 %v1294_v2  ;;  %v387_v2 = vld [vmem:[#allocation4 + $0x208] sm:$0xff] }
  0x81   :  { %v1338_v4 = vpack.c.bf16 %v389_v3, %v387_v2  ;;  %v641_v29 = vld [vmem:[#allocation6 + $0x128] sm:$0xff] }
  0x82   :  { %v645_v34 = vld [vmem:[#allocation6 + $0x148] sm:$0xff] }
  0x83   :  { %1297 = vmatpush1.bf16.msra.mxu0 %v1296_v7  ;;  %v604_v7 = vld [vmem:[#allocation6] sm:$0xff]  ;;  %v649_v35 = vld [vmem:[#allocation6 + $0x168] sm:$0xff] }
  0x84   :  { %1299 = vmatprep.subr.bf16.mxu0 %v1298_v8  ;;  %v1402_v8 = vpack.c.bf16 %v609_v6, %v605_v5  ;;  %v1404_v12 = vpack.c.bf16 %v608_v9, %v604_v7  ;;  %v653_v40 = vld [vmem:[#allocation6 + $0x188] sm:$0xff]  ;;  %v688_v5 = vld [vmem:[#allocation6 + $0x2a0] sm:$0xff] }
  0x85   :  { %v657_v41 = vld [vmem:[#allocation6 + $0x1a8] sm:$0xff] }
  0x86   :  { %1403 = vmatprep.subr.bf16.mxu1 %v1402_v8  ;;  %v661_v46 = vld [vmem:[#allocation6 + $0x1c8] sm:$0xff] }
  0x87   :  { %1301 = vmatpush1.bf16.msra.mxu0 %v1300_v13  ;;  %v1406_v13 = vpack.c.bf16 %v617_v11, %v613_v10  ;;  %1405 = vmatpush1.bf16.msra.mxu1 %v1404_v12  ;;  %v665_v47 = vld [vmem:[#allocation6 + $0x1e8] sm:$0xff]  ;;  %v692_v10 = vld [vmem:[#allocation6 + $0x2c0] sm:$0xff]  ;;  %v156_v12 = vlaneseq }
  0x88   :  { %1303 = vmatprep.subr.bf16.mxu0 %v1302_v14  ;;  %v612_v14 = vld [vmem:[#allocation6 + $0x40] sm:$0xff]  ;;  %v669_v52 = vld [vmem:[#allocation6 + $0x208] sm:$0xff] }
  0x89   :  { %v1408_v18 = vpack.c.bf16 %v616_v15, %v612_v14  ;;  %1407 = vmatprep.subr.bf16.mxu1 %v1406_v13  ;;  %v673_v53 = vld [vmem:[#allocation6 + $0x228] sm:$0xff]  ;;  %v696_v11 = vld [vmem:[#allocation6 + $0x2e0] sm:$0xff]  ;;  %vm1125_vm0 = vcmp.lt.s32.totalorder %v156_v12, 256 }
  0x8a   :  { %v677_v58 = vld [vmem:[#allocation6 + $0x248] sm:$0xff]  ;;  %v1448_v15 = vpack.c.bf16 %v696_v11, %v692_v10  ;;  %v402_v10 = vld [vmem:[#allocation4 + $0x280] sm:$0xff]  ;;  %v404_v11 = vld [vmem:[#allocation4 + $0x290] sm:$0xff] }
  0x8b   :  { %1305 = vmatpush1.bf16.msra.mxu0 %v1304_v19  ;;  %v1410_v19 = vpack.c.bf16 %v625_v17, %v621_v16  ;;  %1409 = vmatpush1.bf16.msra.mxu1 %v1408_v18  ;;  %v685_v0 = vld [vmem:[#allocation6 + $0x288] sm:$0xff]  ;;  %v700_v17 = vld [vmem:[#allocation6 + $0x300] sm:$0xff] }
  0x8c   :  { %1307 = vmatprep.subr.bf16.mxu0 %v1306_v20  ;;  %v620_v20 = vld [vmem:[#allocation6 + $0x80] sm:$0xff]  ;;  %v693_v6 = vld [vmem:[#allocation6 + $0x2c8] sm:$0xff] }
  0x8d   :  { %v1412_v24 = vpack.c.bf16 %v624_v21, %v620_v20  ;;  %1411 = vmatprep.subr.bf16.mxu1 %v1410_v19  ;;  %v697_v7 = vld [vmem:[#allocation6 + $0x2e8] sm:$0xff]  ;;  %v704_v18 = vld [vmem:[#allocation6 + $0x320] sm:$0xff]  ;;  %v1830_v19 = vshrl.u32 %v156_v12, 7 }
  0x8e   :  { %v1446_v9 = vpack.c.bf16 %v697_v7, %v693_v6  ;;  %v701_v13 = vld [vmem:[#allocation6 + $0x308] sm:$0xff]  ;;  %v405_v6 = vld [vmem:[#allocation4 + $0x298] sm:$0xff] }
  0x8f   :  { %1309 = vmatpush1.bf16.msra.mxu0 %v1308_v25  ;;  %v1414_v25 = vpack.c.bf16 %v633_v23, %v629_v22  ;;  %1413 = vmatpush1.bf16.msra.mxu1 %v1412_v24  ;;  %v705_v14 = vld [vmem:[#allocation6 + $0x328] sm:$0xff]  ;;  %v1452_v22 = vpack.c.bf16 %v704_v18, %v700_v17  ;;  %v708_v24 = vld [vmem:[#allocation6 + $0x340] sm:$0xff]  ;;  %v408_v18 = vld [vmem:[#allocation4 + $0x2b0] sm:$0xff] }
  0x90   :  { %1311 = vmatprep.subr.bf16.mxu0 %v1310_v26  ;;  %v628_v26 = vld [vmem:[#allocation6 + $0xc0] sm:$0xff]  ;;  %v1450_v16 = vpack.c.bf16 %v705_v14, %v701_v13  ;;  %v709_v20 = vld [vmem:[#allocation6 + $0x348] sm:$0xff]  ;;  %v409_v14 = vld [vmem:[#allocation4 + $0x2b8] sm:$0xff] }
  0x91   :  { %v1416_v30 = vpack.c.bf16 %v632_v27, %v628_v26  ;;  %1415 = vmatprep.subr.bf16.mxu1 %v1414_v25  ;;  %v713_v21 = vld [vmem:[#allocation6 + $0x368] sm:$0xff]  ;;  %v712_v25 = vld [vmem:[#allocation6 + $0x360] sm:$0xff]  ;;  %v1833_v26 = vsub.s32 0, %v1830_v19 }
  0x92   :  { %v1454_v23 = vpack.c.bf16 %v713_v21, %v709_v20  ;;  %v717_v27 = vld [vmem:[#allocation6 + $0x388] sm:$0xff]  ;;  %v406_v17 = vld [vmem:[#allocation4 + $0x2a0] sm:$0xff]  ;;  %v413_v21 = vld [vmem:[#allocation4 + $0x2d8] sm:$0xff] }
  0x93   :  { %1313 = vmatpush1.bf16.msra.mxu0 %v1312_v31  ;;  %v1418_v31 = vpack.c.bf16 %v641_v29, %v637_v28  ;;  %1417 = vmatpush1.bf16.msra.mxu1 %v1416_v30  ;;  %v721_v28 = vld [vmem:[#allocation6 + $0x3a8] sm:$0xff]  ;;  %v1838_v29 = vld [vmem:[%s1890_s2] sm:$0xf]  ;;  %v1841_v30 = vsub.s32 1, %v1830_v19 }
  0x94   :  { %1315 = vmatprep.subr.bf16.mxu0 %v1314_v32  ;;  %v636_v32 = vld [vmem:[#allocation6 + $0x100] sm:$0xff]  ;;  %v407_v13 = vld [vmem:[#allocation4 + $0x2a8] sm:$0xff] }
  0x95   :  { %v1420_v36 = vpack.c.bf16 %v640_v33, %v636_v32  ;;  %1419 = vmatprep.subr.bf16.mxu1 %v1418_v31  ;;  %v1456_v31 = vpack.c.bf16 %v712_v25, %v708_v24  ;;  %v1458_v32 = vpack.c.bf16 %v721_v28, %v717_v27  ;;  %v716_v33 = vld [vmem:[#allocation6 + $0x380] sm:$0xff]  ;;  %v411_v20 = vld [vmem:[#allocation4 + $0x2c8] sm:$0xff]  ;;  %v412_v25 = vld [vmem:[#allocation4 + $0x2d0] sm:$0xff] }
  0x96   :  { %v410_v24 = vld [vmem:[#allocation4 + $0x2c0] sm:$0xff]  ;;  %v415_v27 = vld [vmem:[#allocation4 + $0x2e8] sm:$0xff]  ;;  %v417_v28 = vld [vmem:[#allocation4 + $0x2f8] sm:$0xff] }
  0x97   :  { %1317 = vmatpush1.bf16.msra.mxu0 %v1316_v37  ;;  %v1422_v37 = vpack.c.bf16 %v649_v35, %v645_v34  ;;  %1421 = vmatpush1.bf16.msra.mxu1 %v1420_v36  ;;  %v720_v34 = vld [vmem:[#allocation6 + $0x3a0] sm:$0xff]  ;;  %v159_v35 = vrot.slane %v1838_v29, %v1833_v26  ;;  %v163_v36 = vrot.slane %v1838_v29, %v1841_v30 }
  0x98   :  { %1319 = vmatprep.subr.bf16.mxu0 %v1318_v38  ;;  %v644_v38 = vld [vmem:[#allocation6 + $0x140] sm:$0xff] }
  0x99   :  { %v1424_v42 = vpack.c.bf16 %v648_v39, %v644_v38  ;;  %1423 = vmatprep.subr.bf16.mxu1 %v1422_v37  ;;  %v1460_v37 = vpack.c.bf16 %v720_v34, %v716_v33  ;;  %v414_v33 = vld [vmem:[#allocation4 + $0x2e0] sm:$0xff]  ;;  %v416_v34 = vld [vmem:[#allocation4 + $0x2f0] sm:$0xff] }
  0x9b   :  { %1321 = vmatpush1.bf16.msra.mxu0 %v1320_v43  ;;  %v1426_v43 = vpack.c.bf16 %v657_v41, %v653_v40  ;;  %1425 = vmatpush1.bf16.msra.mxu1 %v1424_v42  ;;  %v386_v41 = vld [vmem:[#allocation4 + $0x200] sm:$0xff]  ;;  %v388_v42 = vld [vmem:[#allocation4 + $0x210] sm:$0xff] }
  0x9c   :  { %1323 = vmatprep.subr.bf16.mxu0 %v1322_v44  ;;  %v652_v44 = vld [vmem:[#allocation6 + $0x180] sm:$0xff] }
  0x9d   :  { %v1428_v48 = vpack.c.bf16 %v656_v45, %v652_v44  ;;  %1427 = vmatprep.subr.bf16.mxu1 %v1426_v43  ;;  %v391_v44 = vld [vmem:[#allocation4 + $0x228] sm:$0xff]  ;;  %v393_v45 = vld [vmem:[#allocation4 + $0x238] sm:$0xff] }
  0x9f   :  { %1325 = vmatpush1.bf16.msra.mxu0 %v1324_v49  ;;  %v1430_v49 = vpack.c.bf16 %v665_v47, %v661_v46  ;;  %1429 = vmatpush1.bf16.msra.mxu1 %v1428_v48  ;;  %v1340_v47 = vpack.c.bf16 %v388_v42, %v386_v41  ;;  %v423_v41 = vld [vmem:[#allocation4 + $0x328] sm:$0xff]  ;;  %v425_v42 = vld [vmem:[#allocation4 + $0x338] sm:$0xff] }
  0xa0   :  { %1327 = vmatprep.subr.bf16.mxu0 %v1326_v50  ;;  %v660_v50 = vld [vmem:[#allocation6 + $0x1c0] sm:$0xff] }
  0xa1   :  { %v1432_v54 = vpack.c.bf16 %v664_v51, %v660_v50  ;;  %1431 = vmatprep.subr.bf16.mxu1 %v1430_v49  ;;  %v1342_v49 = vpack.c.bf16 %v393_v45, %v391_v44  ;;  %v390_v50 = vld [vmem:[#allocation4 + $0x220] sm:$0xff]  ;;  %v392_v51 = vld [vmem:[#allocation4 + $0x230] sm:$0xff]  ;;  %v1374_v44 = vpack.c.bf16 %v425_v42, %v423_v41  ;;  %v901_v42 = vld [vmem:[#allocation7 + $0x8] sm:$0xff] }
  0xa2   :  { %v422_v45 = vld [vmem:[#allocation4 + $0x320] sm:$0xff] }
  0xa3   :  { %1329 = vmatpush1.bf16.msra.mxu0 %v1328_v55  ;;  %v1434_v55 = vpack.c.bf16 %v673_v53, %v669_v52  ;;  %1433 = vmatpush1.bf16.msra.mxu1 %v1432_v54  ;;  %v170_v52 = vsub.s32 3, %v1830_v19  ;;  %v395_v53 = vld [vmem:[#allocation4 + $0x248] sm:$0xff]  ;;  %v397_v54 = vld [vmem:[#allocation4 + $0x258] sm:$0xff]  ;;  %v900_v41 = vld [vmem:[#allocation7] sm:$0xff] }
  0xa4   :  { %1331 = vmatprep.subr.bf16.mxu0 %v1330_v56  ;;  %v668_v56 = vld [vmem:[#allocation6 + $0x200] sm:$0xff] }
  0xa5   :  { %v1436_v60 = vpack.c.bf16 %v672_v57, %v668_v56  ;;  %1435 = vmatprep.subr.bf16.mxu1 %v1434_v55  ;;  %v1344_v55 = vpack.c.bf16 %v392_v51, %v390_v50  ;;  %v1346_v56 = vpack.c.bf16 %v397_v54, %v395_v53  ;;  %v394_v57 = vld [vmem:[#allocation4 + $0x240] sm:$0xff]  ;;  %v428_v53 = vld [vmem:[#allocation4 + $0x350] sm:$0xff]  ;;  %v431_v54 = vld [vmem:[#allocation4 + $0x368] sm:$0xff] }
  0xa6   :  { %v426_v51 = vld [vmem:[#allocation4 + $0x340] sm:$0xff] }
  0xa7   :  { %1333 = vmatpush1.bf16.msra.mxu0 %v1332_v59  ;;  %v681_v59 = vld [vmem:[#allocation6 + $0x268] sm:$0xff]  ;;  %1437 = vmatpush1.bf16.msra.mxu1 %v1436_v60 }
  0xa8   :  { %1335 = vmatprep.subr.bf16.mxu0 %v1334_v62  ;;  %v1438_v61 = vpack.c.bf16 %v681_v59, %v677_v58  ;;  %v676_v62 = vld [vmem:[#allocation6 + $0x240] sm:$0xff]  ;;  %v396_v58 = vld [vmem:[#allocation4 + $0x250] sm:$0xff]  ;;  %v171_v59 = vrot.slane %v1838_v29, %v170_v52  ;;  %v399_v60 = vld [vmem:[#allocation4 + $0x268] sm:$0xff] }
  0xa9   :  { %v1440_v2 = vpack.c.bf16 %v680_v63, %v676_v62  ;;  %v1348_v63 = vpack.c.bf16 %v396_v58, %v394_v57  ;;  %v430_v58 = vld [vmem:[#allocation4 + $0x360] sm:$0xff] }
  0xaa   :  { %1439 = vmatprep.subr.bf16.mxu1 %v1438_v61  ;;  %v401_v61 = vld [vmem:[#allocation4 + $0x278] sm:$0xff] }
  0xab   :  { %1337 = vmatpush1.bf16.msra.mxu0 %v1336_v1  ;;  %v689_v1 = vld [vmem:[#allocation6 + $0x2a8] sm:$0xff]  ;;  %1441 = vmatpush1.bf16.msra.mxu1 %v1440_v2  ;;  %v398_v2 = vld [vmem:[#allocation4 + $0x260] sm:$0xff] }
  0xac   :  { %1339 = vmatprep.subr.bf16.mxu0 %v1338_v4  ;;  %v1442_v3 = vpack.c.bf16 %v689_v1, %v685_v0  ;;  %v684_v4 = vld [vmem:[#allocation6 + $0x280] sm:$0xff]  ;;  %v1350_v1 = vpack.c.bf16 %v401_v61, %v399_v60  ;;  %v435_v60 = vld [vmem:[#allocation4 + $0x388] sm:$0xff]  ;;  %v437_v61 = vld [vmem:[#allocation4 + $0x398] sm:$0xff] }
  0xad   :  { %v1444_v8 = vpack.c.bf16 %v688_v5, %v684_v4  ;;  %v403_v5 = vld [vmem:[#allocation4 + $0x288] sm:$0xff] }
  0xae   :  { %1443 = vmatprep.subr.bf16.mxu1 %v1442_v3  ;;  %v400_v3 = vld [vmem:[#allocation4 + $0x270] sm:$0xff] }
  0xaf   :  { %1445 = vmatpush1.bf16.msra.mxu1 %v1444_v8  ;;  %v1352_v8 = vpack.c.bf16 %v400_v3, %v398_v2  ;;  %v436_v2 = vld [vmem:[#allocation4 + $0x390] sm:$0xff]  ;;  %v439_v3 = vld [vmem:[#allocation4 + $0x3a8] sm:$0xff] }
  0xb0   :  { %1447 = vmatprep.subr.bf16.mxu1 %v1446_v9  ;;  %v1354_v9 = vpack.c.bf16 %v405_v6, %v403_v5 }
  0xb3   :  { %1449 = vmatpush1.bf16.msra.mxu1 %v1448_v15  ;;  %v1356_v15 = vpack.c.bf16 %v404_v11, %v402_v10  ;;  %v445_v10 = vld [vmem:[#allocation4 + $0x3d8] sm:$0xff] }
  0xb4   :  { %1451 = vmatprep.subr.bf16.mxu1 %v1450_v16  ;;  %v1358_v16 = vpack.c.bf16 %v409_v14, %v407_v13  ;;  %v166_v13 = vsub.s32 2, %v1830_v19 }
  0xb7   :  { %1453 = vmatpush1.bf16.msra.mxu1 %v1452_v22  ;;  %v1360_v22 = vpack.c.bf16 %v408_v18, %v406_v17  ;;  %v447_v17 = vld [vmem:[#allocation4 + $0x3e8] sm:$0xff]  ;;  %v449_v18 = vld [vmem:[#allocation4 + $0x3f8] sm:$0xff] }
  0xb8   :  { %1455 = vmatprep.subr.bf16.mxu1 %v1454_v23  ;;  %v1362_v23 = vpack.c.bf16 %v413_v21, %v411_v20  ;;  %v167_v21 = vrot.slane %v1838_v29, %v166_v13  ;;  %v607_v29 = vld [vmem:[#allocation6 + $0x18] sm:$0xff] }
  0xbb   :  { %1457 = vmatpush1.bf16.msra.mxu1 %v1456_v31  ;;  %v1364_v31 = vpack.c.bf16 %v412_v25, %v410_v24  ;;  %v448_v24 = vld [vmem:[#allocation4 + $0x3f0] sm:$0xff] }
  0xbc   :  { %1459 = vmatprep.subr.bf16.mxu1 %v1458_v32  ;;  %v1366_v32 = vpack.c.bf16 %v417_v28, %v415_v27 }
  0xbf   :  { %1461 = vmatpush1.bf16.msra.mxu1 %v1460_v37  ;;  %v1368_v37 = vpack.c.bf16 %v416_v34, %v414_v33  ;;  %v724_v34 = vld [vmem:[#allocation6 + $0x3c0] sm:$0xff] }
 0x141   :  { %v242_v38 = vpop.f32.mrb[0].mxu0 }
 0x142   :  { %v243_v39 = vadd.f32 %v242_v38, %v159_v35  ;;  %v244_v40 = vpop.f32.mrb[1].mxu0  ;;  %v419_v35 = vld [vmem:[#allocation4 + $0x308] sm:$0xff] }
 0x143   :  { %v245_v43 = vadd.f32 %v244_v40, %v163_v36  ;;  %v1851_v62 = vpop.f32.mrb[0].mxu1  ;;  %v421_v36 = vld [vmem:[#allocation4 + $0x318] sm:$0xff]  ;;  %v420_v40 = vld [vmem:[#allocation4 + $0x310] sm:$0xff] }
 0x144   :  { %v318_v48 = vmax.f32 %v243_v39, 0.0  ;;  %v315_v0 = vpop.f32.mrb[1].mxu1  ;;  %v1370_v38 = vpack.c.bf16 %v421_v36, %v419_v35  ;;  %v418_v39 = vld [vmem:[#allocation4 + $0x300] sm:$0xff]  ;;  %v314_v27 = vadd.f32 %v1851_v62, %v167_v21 }
 0x145   :  { %v319_v46 = vmax.f32 %v245_v43, 0.0  ;;  %v316_v4 = vadd.f32 %v315_v0, %v171_v59  ;;  %v1372_v43 = vpack.c.bf16 %v420_v40, %v418_v39  ;;  %v432_v59 = vld [vmem:[#allocation4 + $0x370] sm:$0xff]  ;;  %v1386_v0 = vpack.c.bf16 %v437_v61, %v435_v60  ;;  %v728_v35 = vld [vmem:[#allocation6 + $0x3e0] sm:$0xff]  ;;  %v917_v40 = vld [vmem:[#allocation7 + $0x88] sm:$0xff] }
 0x146   :  { %v320_v28 = vmax.f32 %v314_v27, 0.0  ;;  %v1464_v36 = vpack.c.bf16 %v728_v35, %v724_v34  ;;  %v916_v39 = vld [vmem:[#allocation7 + $0x80] sm:$0xff]  ;;  %v906_v60 = vld [vmem:[#allocation7 + $0x30] sm:$0xff]  ;;  %v907_v61 = vld [vmem:[#allocation7 + $0x38] sm:$0xff] }
 0x147   :  { %526 = vmatprep.mubr.f32.mxu0 %v319_v46  ;;  %v321_v7 = vmax.f32 %v316_v4, 0.0  ;;  %v424_v46 = vld [vmem:[#allocation4 + $0x330] sm:$0xff]  ;;  %v441_v4 = vld [vmem:[#allocation4 + $0x3b8] sm:$0xff]  ;;  %v1530_v62 = vpack.c.bf16 %v917_v40, %v916_v39 }
 0x148   :  { %527 = vmatmul.mubr.f32.vlgmr.msra.gmra.mrb[2].mxu0 %v318_v48  ;;  %v429_v48 = vld [vmem:[#allocation4 + $0x358] sm:$0xff]  ;;  %v1390_v6 = vpack.c.bf16 %v441_v4, %v439_v3  ;;  %v908_v3 = vld [vmem:[#allocation7 + $0x40] sm:$0xff]  ;;  %v909_v4 = vld [vmem:[#allocation7 + $0x48] sm:$0xff] }
 0x149   :  { %1341 = vmatpush1.bf16.msra.mxu0 %v1340_v47  ;;  %597 = vmatprep.mubr.f32.mxu0 %v321_v7  ;;  %v427_v47 = vld [vmem:[#allocation4 + $0x348] sm:$0xff]  ;;  %v438_v7 = vld [vmem:[#allocation4 + $0x3a0] sm:$0xff]  ;;  %v623_v40 = vld [vmem:[#allocation6 + $0x98] sm:$0xff] }
 0x14a   :  { %1343 = vmatprep.subr.bf16.mxu0 %v1342_v49  ;;  %v1376_v49 = vpack.c.bf16 %v424_v46, %v422_v45  ;;  %v1378_v50 = vpack.c.bf16 %v429_v48, %v427_v47  ;;  %v1532_v45 = vpack.c.bf16 %v901_v42, %v900_v41  ;;  %v902_v47 = vld [vmem:[#allocation7 + $0x10] sm:$0xff]  ;;  %v903_v48 = vld [vmem:[#allocation7 + $0x18] sm:$0xff] }
 0x14b   :  { %v627_v41 = vld [vmem:[#allocation6 + $0xb8] sm:$0xff] }
 0x14d   :  { %1345 = vmatpush1.bf16.msra.mxu0 %v1344_v55  ;;  %v433_v55 = vld [vmem:[#allocation4 + $0x378] sm:$0xff] }
 0x14e   :  { %1347 = vmatprep.subr.bf16.mxu0 %v1346_v56  ;;  %v1380_v56 = vpack.c.bf16 %v428_v53, %v426_v51  ;;  %v1382_v57 = vpack.c.bf16 %v433_v55, %v431_v54  ;;  %v1536_v51 = vpack.c.bf16 %v903_v48, %v902_v47  ;;  %v904_v54 = vld [vmem:[#allocation7 + $0x20] sm:$0xff]  ;;  %v905_v55 = vld [vmem:[#allocation7 + $0x28] sm:$0xff]  ;;  %v631_v47 = vld [vmem:[#allocation6 + $0xd8] sm:$0xff] }
 0x14f   :  { %v635_v48 = vld [vmem:[#allocation6 + $0xf8] sm:$0xff] }
 0x151   :  { %1349 = vmatpush1.bf16.msra.mxu0 %v1348_v63  ;;  %v1384_v63 = vpack.c.bf16 %v432_v59, %v430_v58  ;;  %v1540_v58 = vpack.c.bf16 %v905_v55, %v904_v54  ;;  %v639_v54 = vld [vmem:[#allocation6 + $0x118] sm:$0xff] }
 0x152   :  { %1351 = vmatprep.subr.bf16.mxu0 %v1350_v1  ;;  %v434_v1 = vld [vmem:[#allocation4 + $0x380] sm:$0xff]  ;;  %v643_v55 = vld [vmem:[#allocation6 + $0x138] sm:$0xff] }
 0x153   :  { %v1388_v5 = vpack.c.bf16 %v436_v2, %v434_v1  ;;  %v1544_v1 = vpack.c.bf16 %v907_v61, %v906_v60  ;;  %v651_v60 = vld [vmem:[#allocation6 + $0x178] sm:$0xff] }
 0x155   :  { %1353 = vmatpush1.bf16.msra.mxu0 %v1352_v8  ;;  %v440_v8 = vld [vmem:[#allocation4 + $0x3b0] sm:$0xff] }
 0x156   :  { %1355 = vmatprep.subr.bf16.mxu0 %v1354_v9  ;;  %v443_v9 = vld [vmem:[#allocation4 + $0x3c8] sm:$0xff]  ;;  %v1392_v11 = vpack.c.bf16 %v440_v8, %v438_v7  ;;  %v1548_v7 = vpack.c.bf16 %v909_v4, %v908_v3  ;;  %v659_v3 = vld [vmem:[#allocation6 + $0x1b8] sm:$0xff] }
 0x157   :  { %v1394_v14 = vpack.c.bf16 %v445_v10, %v443_v9  ;;  %v910_v9 = vld [vmem:[#allocation7 + $0x50] sm:$0xff]  ;;  %v911_v10 = vld [vmem:[#allocation7 + $0x58] sm:$0xff] }
 0x159   :  { %1357 = vmatpush1.bf16.msra.mxu0 %v1356_v15  ;;  %v442_v15 = vld [vmem:[#allocation4 + $0x3c0] sm:$0xff] }
 0x15a   :  { %1359 = vmatprep.subr.bf16.mxu0 %v1358_v16  ;;  %v444_v16 = vld [vmem:[#allocation4 + $0x3d0] sm:$0xff] }
 0x15b   :  { %v1396_v20 = vpack.c.bf16 %v444_v16, %v442_v15  ;;  %v1552_v15 = vpack.c.bf16 %v911_v10, %v910_v9  ;;  %v667_v9 = vld [vmem:[#allocation6 + $0x1f8] sm:$0xff] }
 0x15d   :  { %1361 = vmatpush1.bf16.msra.mxu0 %v1360_v22  ;;  %v1398_v22 = vpack.c.bf16 %v449_v18, %v447_v17  ;;  %v450_v17 = vld [vmem:[%s1892_s4] sm:$0x3]  ;;  %v1715_v18 = vmov 1966171168  }
 0x15e   :  { %1363 = vmatprep.subr.bf16.mxu0 %v1362_v23  ;;  %v446_v23 = vld [vmem:[#allocation4 + $0x3e0] sm:$0xff]  ;;  %v455_v21 = vrot.slane %v450_v17, %v1833_v26 }
 0x15f   :  { %v1400_v25 = vpack.c.bf16 %v448_v24, %v446_v23  ;;  %v606_v24 = vld [vmem:[#allocation6 + $0x10] sm:$0xff] }
 0x161   :  { %1365 = vmatpush1.bf16.msra.mxu0 %v1364_v31  ;;  %v725_v31 = vld [vmem:[#allocation6 + $0x3c8] sm:$0xff] }
 0x162   :  { %1367 = vmatprep.subr.bf16.mxu0 %v1366_v32  ;;  %v729_v32 = vld [vmem:[#allocation6 + $0x3e8] sm:$0xff] }
 0x163   :  { %v1462_v33 = vpack.c.bf16 %v729_v32, %v725_v31  ;;  %v619_v31 = vld [vmem:[#allocation6 + $0x78] sm:$0xff] }
 0x165   :  { %1369 = vmatpush1.bf16.msra.mxu0 %v1368_v37  ;;  %1463 = vmatprep.subr.bf16.mxu1 %v1462_v33  ;;  %v611_v37 = vld [vmem:[#allocation6 + $0x38] sm:$0xff] }
 0x166   :  { %1371 = vmatprep.subr.bf16.mxu0 %v1370_v38  ;;  %1465 = vmatpush1.bf16.msra.mxu1 %v1464_v36  ;;  %v1466_v38 = vpack.c.bf16 %v611_v37, %v607_v29  ;;  %v614_v37 = vld [vmem:[#allocation6 + $0x50] sm:$0xff] }
 0x168   :  { %1467 = vmatprep.subr.bf16.mxu1 %v1466_v38  ;;  %v618_v38 = vld [vmem:[#allocation6 + $0x70] sm:$0xff] }
 0x169   :  { %1373 = vmatpush1.bf16.msra.mxu0 %v1372_v43  ;;  %v918_v43 = vld [vmem:[#allocation7 + $0x90] sm:$0xff]  ;;  %v1472_v42 = vpack.c.bf16 %v618_v38, %v614_v37  ;;  %v695_v38 = vld [vmem:[#allocation6 + $0x2d8] sm:$0xff] }
 0x16a   :  { %1375 = vmatprep.subr.bf16.mxu0 %v1374_v44  ;;  %v919_v44 = vld [vmem:[#allocation7 + $0x98] sm:$0xff]  ;;  %v690_v37 = vld [vmem:[#allocation6 + $0x2b0] sm:$0xff] }
 0x16b   :  { %v1534_v46 = vpack.c.bf16 %v919_v44, %v918_v43  ;;  %v1474_v43 = vpack.c.bf16 %v627_v41, %v623_v40  ;;  %v622_v44 = vld [vmem:[#allocation6 + $0x90] sm:$0xff] }
 0x16d   :  { %1377 = vmatpush1.bf16.msra.mxu0 %v1376_v49  ;;  %v920_v49 = vld [vmem:[#allocation7 + $0xa0] sm:$0xff] }
 0x16e   :  { %1379 = vmatprep.subr.bf16.mxu0 %v1378_v50  ;;  %v921_v50 = vld [vmem:[#allocation7 + $0xa8] sm:$0xff] }
 0x16f   :  { %v1538_v53 = vpack.c.bf16 %v921_v50, %v920_v49  ;;  %v1478_v50 = vpack.c.bf16 %v635_v48, %v631_v47  ;;  %v702_v47 = vld [vmem:[#allocation6 + $0x310] sm:$0xff] }
 0x170   :  { %v706_v48 = vld [vmem:[#allocation6 + $0x330] sm:$0xff] }
 0x171   :  { %1381 = vmatpush1.bf16.msra.mxu0 %v1380_v56  ;;  %v922_v56 = vld [vmem:[#allocation7 + $0xb0] sm:$0xff] }
 0x172   :  { %1383 = vmatprep.subr.bf16.mxu0 %v1382_v57  ;;  %v923_v57 = vld [vmem:[#allocation7 + $0xb8] sm:$0xff] }
 0x173   :  { %v1542_v59 = vpack.c.bf16 %v923_v57, %v922_v56  ;;  %v1482_v56 = vpack.c.bf16 %v643_v55, %v639_v54  ;;  %v638_v57 = vld [vmem:[#allocation6 + $0x110] sm:$0xff] }
 0x174   :  { %v710_v54 = vld [vmem:[#allocation6 + $0x350] sm:$0xff] }
 0x175   :  { %1385 = vmatpush1.bf16.msra.mxu0 %v1384_v63  ;;  %v924_v63 = vld [vmem:[#allocation7 + $0xc0] sm:$0xff]  ;;  %v714_v55 = vld [vmem:[#allocation6 + $0x370] sm:$0xff] }
 0x176   :  { %1387 = vmatprep.subr.bf16.mxu0 %v1386_v0  ;;  %v925_v0 = vld [vmem:[#allocation7 + $0xc8] sm:$0xff] }
 0x177   :  { %v1546_v2 = vpack.c.bf16 %v925_v0, %v924_v63  ;;  %v646_v0 = vld [vmem:[#allocation6 + $0x150] sm:$0xff] }
 0x179   :  { %1389 = vmatpush1.bf16.msra.mxu0 %v1388_v5  ;;  %v926_v5 = vld [vmem:[#allocation7 + $0xd0] sm:$0xff] }
 0x17a   :  { %1391 = vmatprep.subr.bf16.mxu0 %v1390_v6  ;;  %v927_v6 = vld [vmem:[#allocation7 + $0xd8] sm:$0xff] }
 0x17b   :  { %v1550_v8 = vpack.c.bf16 %v927_v6, %v926_v5  ;;  %v654_v6 = vld [vmem:[#allocation6 + $0x190] sm:$0xff] }
 0x17d   :  { %1393 = vmatpush1.bf16.msra.mxu0 %v1392_v11  ;;  %v928_v11 = vld [vmem:[#allocation7 + $0xe0] sm:$0xff] }
 0x17e   :  { %1395 = vmatprep.subr.bf16.mxu0 %v1394_v14  ;;  %v929_v14 = vld [vmem:[#allocation7 + $0xe8] sm:$0xff] }
 0x17f   :  { %v1554_v16 = vpack.c.bf16 %v929_v14, %v928_v11  ;;  %v662_v14 = vld [vmem:[#allocation6 + $0x1d0] sm:$0xff] }
 0x181   :  { %1397 = vmatpush1.bf16.msra.mxu0 %v1396_v20  ;;  %v1109_v20 = vunpack.c.l.s4 %v1715_v18 }
 0x182   :  { %1399 = vmatprep.subr.bf16.mxu0 %v1398_v22  ;;  %v459_v22 = vrot.slane %v450_v17, %v1841_v30  ;;  %v675_v17 = vld [vmem:[#allocation6 + $0x238] sm:$0xff] }
 0x183   :  { %v1110_v23 = vunpack.c.0.s8 %v1109_v20 }
 0x185   :  { %1401 = vmatpush1.bf16.msra.mxu0 %v1400_v25  ;;  %v610_v25 = vld [vmem:[#allocation6 + $0x30] sm:$0xff]  ;;  %v1113_v35 = vsub.s32 %v1110_v23, %v1830_v19  ;;  %v679_v23 = vld [vmem:[#allocation6 + $0x258] sm:$0xff] }
 0x186   :  { %1531 = vmatprep.subr.bf16.mxu0 %v1530_v62  ;;  %v1468_v36 = vpack.c.bf16 %v610_v25, %v606_v24  ;;  %v683_v24 = vld [vmem:[#allocation6 + $0x278] sm:$0xff] }
 0x188   :  { %598 = vmatmul.mubr.f32.vlgmr.msra.gmra.mrb[2].mxu0 %v320_v28  ;;  %v615_v28 = vld [vmem:[#allocation6 + $0x58] sm:$0xff] }
 0x189   :  { %1533 = vmatpush3.bf16.msra.mxu0 %v1532_v45  ;;  %v1470_v29 = vpack.c.bf16 %v619_v31, %v615_v28  ;;  %v626_v45 = vld [vmem:[#allocation6 + $0xb0] sm:$0xff] }
 0x18a   :  { %1535 = vmatprep.subr.bf16.mxu0 %v1534_v46  ;;  %v1476_v49 = vpack.c.bf16 %v626_v45, %v622_v44  ;;  %v678_v28 = vld [vmem:[#allocation6 + $0x250] sm:$0xff]  ;;  %v707_v44 = vld [vmem:[#allocation6 + $0x338] sm:$0xff] }
 0x18b   :  { %v682_v31 = vld [vmem:[#allocation6 + $0x270] sm:$0xff] }
 0x18d   :  { %1537 = vmatpush3.bf16.msra.mxu0 %v1536_v51  ;;  %v630_v51 = vld [vmem:[#allocation6 + $0xd0] sm:$0xff] }
 0x18e   :  { %1539 = vmatprep.subr.bf16.mxu0 %v1538_v53  ;;  %v634_v53 = vld [vmem:[#allocation6 + $0xf0] sm:$0xff] }
 0x18f   :  { %v1480_v12 = vpack.c.bf16 %v634_v53, %v630_v51  ;;  %v1516_v51 = vpack.c.bf16 %v706_v48, %v702_v47  ;;  %v958_v47 = vld [vmem:[#allocation7 + $0x1d0] sm:$0xff]  ;;  %v959_v48 = vld [vmem:[#allocation7 + $0x1d8] sm:$0xff] }
 0x191   :  { %1541 = vmatpush3.bf16.msra.mxu0 %v1540_v58  ;;  %v642_v58 = vld [vmem:[#allocation6 + $0x130] sm:$0xff] }
 0x192   :  { %1543 = vmatprep.subr.bf16.mxu0 %v1542_v59  ;;  %v647_v59 = vld [vmem:[#allocation6 + $0x158] sm:$0xff]  ;;  %v1484_v61 = vpack.c.bf16 %v642_v58, %v638_v57  ;;  %v1520_v57 = vpack.c.bf16 %v714_v55, %v710_v54  ;;  %v960_v54 = vld [vmem:[#allocation7 + $0x1e0] sm:$0xff]  ;;  %v961_v55 = vld [vmem:[#allocation7 + $0x1e8] sm:$0xff] }
 0x193   :  { %v1486_v63 = vpack.c.bf16 %v651_v60, %v647_v59  ;;  %v718_v59 = vld [vmem:[#allocation6 + $0x390] sm:$0xff] }
 0x194   :  { %v722_v60 = vld [vmem:[#allocation6 + $0x3b0] sm:$0xff] }
 0x195   :  { %1545 = vmatpush3.bf16.msra.mxu0 %v1544_v1  ;;  %v650_v1 = vld [vmem:[#allocation6 + $0x170] sm:$0xff] }
 0x196   :  { %1547 = vmatprep.subr.bf16.mxu0 %v1546_v2  ;;  %v655_v2 = vld [vmem:[#allocation6 + $0x198] sm:$0xff]  ;;  %v1488_v4 = vpack.c.bf16 %v650_v1, %v646_v0  ;;  %v1524_v0 = vpack.c.bf16 %v722_v60, %v718_v59  ;;  %v962_v60 = vld [vmem:[#allocation7 + $0x1f0] sm:$0xff] }
 0x197   :  { %v1490_v5 = vpack.c.bf16 %v659_v3, %v655_v2  ;;  %v726_v2 = vld [vmem:[#allocation6 + $0x3d0] sm:$0xff] }
 0x198   :  { %v730_v3 = vld [vmem:[#allocation6 + $0x3f0] sm:$0xff] }
 0x199   :  { %1549 = vmatpush3.bf16.msra.mxu0 %v1548_v7  ;;  %v658_v7 = vld [vmem:[#allocation6 + $0x1b0] sm:$0xff] }
 0x19a   :  { %1551 = vmatprep.subr.bf16.mxu0 %v1550_v8  ;;  %v663_v8 = vld [vmem:[#allocation6 + $0x1d8] sm:$0xff]  ;;  %v1492_v10 = vpack.c.bf16 %v658_v7, %v654_v6  ;;  %v913_v6 = vld [vmem:[#allocation7 + $0x68] sm:$0xff] }
 0x19b   :  { %v1494_v11 = vpack.c.bf16 %v667_v9, %v663_v8  ;;  %v930_v8 = vld [vmem:[#allocation7 + $0xf0] sm:$0xff]  ;;  %v931_v9 = vld [vmem:[#allocation7 + $0xf8] sm:$0xff] }
 0x19d   :  { %1553 = vmatpush3.bf16.msra.mxu0 %v1552_v15  ;;  %v666_v15 = vld [vmem:[#allocation6 + $0x1f0] sm:$0xff] }
 0x19e   :  { %1555 = vmatprep.subr.bf16.mxu0 %v1554_v16  ;;  %v671_v16 = vld [vmem:[#allocation6 + $0x218] sm:$0xff]  ;;  %v1496_v18 = vpack.c.bf16 %v666_v15, %v662_v14 }
 0x19f   :  { %v1498_v20 = vpack.c.bf16 %v675_v17, %v671_v16  ;;  %v915_v14 = vld [vmem:[#allocation7 + $0x78] sm:$0xff]  ;;  %v948_v16 = vld [vmem:[#allocation7 + $0x180] sm:$0xff]  ;;  %v949_v17 = vld [vmem:[#allocation7 + $0x188] sm:$0xff] }
 0x25b   :  { %v599_v27 = vpop.f32.mrb[2].mxu0 }
 0x25c   :  { %v1863_v32 = vadd.f32 %v599_v27, %v455_v21  ;;  %v601_v33 = vpop.f32.mrb[3].mxu0  ;;  %v670_v21 = vld [vmem:[#allocation6 + $0x210] sm:$0xff]  ;;  %v1502_v27 = vpack.c.bf16 %v683_v24, %v679_v23  ;;  %v951_v23 = vld [vmem:[#allocation7 + $0x198] sm:$0xff] }
 0x25d   :  { %v1595_v34 = vadd.f32 %v601_v33, %v459_v22  ;;  %v674_v22 = vld [vmem:[#allocation6 + $0x230] sm:$0xff]  ;;  %v687_v33 = vld [vmem:[#allocation6 + $0x298] sm:$0xff] }
 0x25e   :  { %v1500_v25 = vpack.c.bf16 %v674_v22, %v670_v21  ;;  %v933_v21 = vld [vmem:[#allocation7 + $0x108] sm:$0xff]  ;;  %v950_v22 = vld [vmem:[#allocation7 + $0x190] sm:$0xff] }
 0x25f   :  { %v1107_v39 = vcombine.low %v1863_v32, %v1595_v34  ;;  %818 = vmatprep.mubr.f32.mxu1 %v1595_v34  ;;  %v1566_v24 = vpack.c.bf16 %v951_v23, %v950_v22 }
 0x260   :  { %819 = vmatmul.mubr.f32.vlgmr.msra.gmra.mrb[2].mxu1 %v1863_v32 }
 0x261   :  { %v1114_v62 = vrot.slane %v1107_v39, %v1113_v35  ;;  %1469 = vmatpush1.bf16.msra.mxu1 %v1468_v36  ;;  %889 = vmatprep.mubr.f32.mxu1 %v1595_v34  ;;  %v691_v34 = vld [vmem:[#allocation6 + $0x2b8] sm:$0xff] }
 0x262   :  { %1471 = vmatprep.subr.bf16.mxu1 %v1470_v29  ;;  %v1506_v36 = vpack.c.bf16 %v691_v34, %v687_v33  ;;  %v686_v29 = vld [vmem:[#allocation6 + $0x290] sm:$0xff]  ;;  %v699_v39 = vld [vmem:[#allocation6 + $0x2f8] sm:$0xff] }
 0x263   :  { %v1121_v46 = vrot.slane %v1114_v62, %v1113_v35  ;;  %v1504_v35 = vpack.c.bf16 %v682_v31, %v678_v28  ;;  %v1508_v40 = vpack.c.bf16 %v690_v37, %v686_v29  ;;  %v1510_v41 = vpack.c.bf16 %v699_v39, %v695_v38  ;;  %v694_v62 = vld [vmem:[#allocation6 + $0x2d0] sm:$0xff]  ;;  %v952_v28 = vld [vmem:[#allocation7 + $0x1a0] sm:$0xff]  ;;  %v953_v31 = vld [vmem:[#allocation7 + $0x1a8] sm:$0xff] }
 0x264   :  { %v1570_v34 = vpack.c.bf16 %v953_v31, %v952_v28  ;;  %v954_v29 = vld [vmem:[#allocation7 + $0x1b0] sm:$0xff]  ;;  %v955_v37 = vld [vmem:[#allocation7 + $0x1b8] sm:$0xff] }
 0x265   :  { %1127 = vst.msk [vmem:[%s1897_s9] sm:$0x3] %vm1125_vm0, %v1121_v46  ;;  %1473 = vmatpush1.bf16.msra.mxu1 %v1472_v42  ;;  %v698_v42 = vld [vmem:[#allocation6 + $0x2f0] sm:$0xff]  ;;  %v1574_v39 = vpack.c.bf16 %v955_v37, %v954_v29 }
 0x266   :  { %1475 = vmatprep.subr.bf16.mxu1 %v1474_v43  ;;  %v703_v43 = vld [vmem:[#allocation6 + $0x318] sm:$0xff]  ;;  %v1512_v45 = vpack.c.bf16 %v698_v42, %v694_v62  ;;  %v956_v62 = vld [vmem:[#allocation7 + $0x1c0] sm:$0xff]  ;;  %v957_v42 = vld [vmem:[#allocation7 + $0x1c8] sm:$0xff] }
 0x267   :  { %v1514_v46 = vpack.c.bf16 %v707_v44, %v703_v43  ;;  %v1578_v44 = vpack.c.bf16 %v957_v42, %v956_v62 }
 0x269   :  { %1477 = vmatpush1.bf16.msra.mxu1 %v1476_v49  ;;  %v711_v49 = vld [vmem:[#allocation6 + $0x358] sm:$0xff] }
 0x26a   :  { %1479 = vmatprep.subr.bf16.mxu1 %v1478_v50  ;;  %v715_v50 = vld [vmem:[#allocation6 + $0x378] sm:$0xff] }
 0x26b   :  { %v1518_v53 = vpack.c.bf16 %v715_v50, %v711_v49  ;;  %v1582_v50 = vpack.c.bf16 %v959_v48, %v958_v47 }
 0x26d   :  { %1481 = vmatpush1.bf16.msra.mxu1 %v1480_v12  ;;  %v719_v12 = vld [vmem:[#allocation6 + $0x398] sm:$0xff] }
 0x26e   :  { %1483 = vmatprep.subr.bf16.mxu1 %v1482_v56  ;;  %v723_v56 = vld [vmem:[#allocation6 + $0x3b8] sm:$0xff] }
 0x26f   :  { %v1522_v58 = vpack.c.bf16 %v723_v56, %v719_v12  ;;  %v1586_v56 = vpack.c.bf16 %v961_v55, %v960_v54 }
 0x271   :  { %1485 = vmatpush1.bf16.msra.mxu1 %v1484_v61  ;;  %v727_v61 = vld [vmem:[#allocation6 + $0x3d8] sm:$0xff] }
 0x272   :  { %1487 = vmatprep.subr.bf16.mxu1 %v1486_v63  ;;  %v731_v63 = vld [vmem:[#allocation6 + $0x3f8] sm:$0xff] }
 0x273   :  { %v1526_v1 = vpack.c.bf16 %v731_v63, %v727_v61  ;;  %v963_v61 = vld [vmem:[#allocation7 + $0x1f8] sm:$0xff] }
 0x274   :  { %v1590_v63 = vpack.c.bf16 %v963_v61, %v962_v60 }
 0x275   :  { %1489 = vmatpush1.bf16.msra.mxu1 %v1488_v4  ;;  %v1528_v4 = vpack.c.bf16 %v730_v3, %v726_v2  ;;  %v732_v3 = vld [vmem:[%s1894_s6] sm:$0xf] }
 0x276   :  { %1491 = vmatprep.subr.bf16.mxu1 %v1490_v5  ;;  %v912_v5 = vld [vmem:[#allocation7 + $0x60] sm:$0xff] }
 0x277   :  { %v1556_v7 = vpack.c.bf16 %v913_v6, %v912_v5  ;;  %v741_v5 = vrot.slane %v732_v3, %v1841_v30 }
 0x279   :  { %1493 = vmatpush1.bf16.msra.mxu1 %v1492_v10  ;;  %1557 = vmatpush3.bf16.msra.mxu0 %v1556_v7  ;;  %v1558_v10 = vpack.c.bf16 %v931_v9, %v930_v8 }
 0x27a   :  { %1495 = vmatprep.subr.bf16.mxu1 %v1494_v11  ;;  %v914_v11 = vld [vmem:[#allocation7 + $0x70] sm:$0xff] }
 0x27b   :  { %v1560_v15 = vpack.c.bf16 %v915_v14, %v914_v11  ;;  %1559 = vmatprep.subr.bf16.mxu0 %v1558_v10  ;;  %v745_v14 = vrot.slane %v732_v3, %v166_v13 }
 0x27d   :  { %1497 = vmatpush1.bf16.msra.mxu1 %v1496_v18  ;;  %1561 = vmatpush3.bf16.msra.mxu0 %v1560_v15  ;;  %v932_v18 = vld [vmem:[#allocation7 + $0x100] sm:$0xff]  ;;  %v749_v15 = vrot.slane %v732_v3, %v170_v52 }
 0x27e   :  { %1499 = vmatprep.subr.bf16.mxu1 %v1498_v20  ;;  %v1562_v20 = vpack.c.bf16 %v949_v17, %v948_v16 }
 0x281   :  { %1501 = vmatpush1.bf16.msra.mxu1 %v1500_v25  ;;  %v934_v25 = vld [vmem:[#allocation7 + $0x110] sm:$0xff] }
 0x282   :  { %1503 = vmatprep.subr.bf16.mxu1 %v1502_v27  ;;  %v935_v27 = vld [vmem:[#allocation7 + $0x118] sm:$0xff] }
 0x283   :  { %v1568_v33 = vpack.c.bf16 %v935_v27, %v934_v25 }
 0x285   :  { %1505 = vmatpush1.bf16.msra.mxu1 %v1504_v35  ;;  %v936_v35 = vld [vmem:[#allocation7 + $0x120] sm:$0xff] }
 0x286   :  { %1507 = vmatprep.subr.bf16.mxu1 %v1506_v36  ;;  %v937_v36 = vld [vmem:[#allocation7 + $0x128] sm:$0xff] }
 0x287   :  { %v1572_v38 = vpack.c.bf16 %v937_v36, %v936_v35 }
 0x289   :  { %1509 = vmatpush1.bf16.msra.mxu1 %v1508_v40  ;;  %v938_v40 = vld [vmem:[#allocation7 + $0x130] sm:$0xff] }
 0x28a   :  { %1511 = vmatprep.subr.bf16.mxu1 %v1510_v41  ;;  %v939_v41 = vld [vmem:[#allocation7 + $0x138] sm:$0xff] }
 0x28b   :  { %v1576_v43 = vpack.c.bf16 %v939_v41, %v938_v40 }
 0x28d   :  { %1513 = vmatpush1.bf16.msra.mxu1 %v1512_v45  ;;  %v940_v45 = vld [vmem:[#allocation7 + $0x140] sm:$0xff] }
 0x28e   :  { %1515 = vmatprep.subr.bf16.mxu1 %v1514_v46  ;;  %v941_v46 = vld [vmem:[#allocation7 + $0x148] sm:$0xff] }
 0x28f   :  { %v1580_v49 = vpack.c.bf16 %v941_v46, %v940_v45 }
 0x291   :  { %1517 = vmatpush1.bf16.msra.mxu1 %v1516_v51  ;;  %v942_v51 = vld [vmem:[#allocation7 + $0x150] sm:$0xff] }
 0x292   :  { %1519 = vmatprep.subr.bf16.mxu1 %v1518_v53  ;;  %v943_v53 = vld [vmem:[#allocation7 + $0x158] sm:$0xff] }
 0x293   :  { %v1584_v12 = vpack.c.bf16 %v943_v53, %v942_v51 }
 0x295   :  { %1521 = vmatpush1.bf16.msra.mxu1 %v1520_v57  ;;  %v944_v57 = vld [vmem:[#allocation7 + $0x160] sm:$0xff] }
 0x296   :  { %1523 = vmatprep.subr.bf16.mxu1 %v1522_v58  ;;  %v945_v58 = vld [vmem:[#allocation7 + $0x168] sm:$0xff] }
 0x297   :  { %v1588_v59 = vpack.c.bf16 %v945_v58, %v944_v57 }
 0x299   :  { %1525 = vmatpush1.bf16.msra.mxu1 %v1524_v0  ;;  %v946_v0 = vld [vmem:[#allocation7 + $0x170] sm:$0xff] }
 0x29a   :  { %1527 = vmatprep.subr.bf16.mxu1 %v1526_v1  ;;  %v947_v1 = vld [vmem:[#allocation7 + $0x178] sm:$0xff] }
 0x29b   :  { %v1592_v2 = vpack.c.bf16 %v947_v1, %v946_v0 }
 0x29d   :  { %1529 = vmatpush1.bf16.msra.mxu1 %v1528_v4  ;;  %v737_v4 = vrot.slane %v732_v3, %v1833_v26 }
 0x29e   :  { %1563 = vmatprep.subr.bf16.mxu1 %v1562_v20 }
 0x2a0   :  { %890 = vmatmul.mubr.f32.vlgmr.msra.gmra.mrb[4].mxu1 %v1863_v32  ;;  %v1564_v32 = vpack.c.bf16 %v933_v21, %v932_v18 }
 0x2a2   :  { %1565 = vmatpush3.bf16.msra.mxu1 %v1564_v32  ;;  %v964_v32 = vld [vmem:[%s1896_s8] sm:$0x1] }
 0x2a3   :  { %1567 = vmatprep.subr.bf16.mxu1 %v1566_v24 }
 0x2a6   :  { %1569 = vmatpush3.bf16.msra.mxu1 %v1568_v33 }
 0x2a7   :  { %1571 = vmatprep.subr.bf16.mxu1 %v1570_v34 }
 0x2aa   :  { %1573 = vmatpush3.bf16.msra.mxu1 %v1572_v38 }
 0x2ab   :  { %1575 = vmatprep.subr.bf16.mxu1 %v1574_v39 }
 0x2ae   :  { %1577 = vmatpush3.bf16.msra.mxu1 %v1576_v43 }
 0x2af   :  { %1579 = vmatprep.subr.bf16.mxu1 %v1578_v44 }
 0x2b2   :  { %1581 = vmatpush3.bf16.msra.mxu1 %v1580_v49 }
 0x2b3   :  { %1583 = vmatprep.subr.bf16.mxu1 %v1582_v50 }
 0x2b6   :  { %1585 = vmatpush3.bf16.msra.mxu1 %v1584_v12 }
 0x2b7   :  { %1587 = vmatprep.subr.bf16.mxu1 %v1586_v56 }
 0x2ba   :  { %1589 = vmatpush3.bf16.msra.mxu1 %v1588_v59 }
 0x2bb   :  { %1591 = vmatprep.subr.bf16.mxu1 %v1590_v63 }
 0x2be   :  { %1593 = vmatpush3.bf16.msra.mxu1 %v1592_v2 }
 0x333   :  { %v820_v6 = vpop.f32.mrb[2].mxu1 }
 0x334   :  { %v821_v7 = vadd.f32 %v820_v6, %v737_v4  ;;  %v822_v8 = vpop.f32.mrb[3].mxu1 }
 0x335   :  { %v823_v9 = vadd.f32 %v822_v8, %v741_v5 }
 0x336   :  { %v896_v11 = vmax.f32 %v821_v7, 0.0 }
 0x337   :  { %v897_v10 = vmax.f32 %v823_v9, 0.0 }
 0x339   :  { %1029 = vmatprep.mubr.f32.mxu0 %v897_v10 }
 0x33a   :  { %1030 = vmatmul.mubr.f32.vlgmr.msra.gmra.mrb[4].mxu0 %v896_v11 }
 0x373   :  { %v891_v16 = vpop.f32.mrb[4].mxu1 }
 0x374   :  { %v892_v17 = vadd.f32 %v891_v16, %v745_v14  ;;  %v893_v18 = vpop.f32.mrb[5].mxu1 }
 0x375   :  { %v894_v26 = vadd.f32 %v893_v18, %v749_v15 }
 0x376   :  { %v898_v30 = vmax.f32 %v892_v17, 0.0 }
 0x377   :  { %v899_v20 = vmax.f32 %v894_v26, 0.0 }
 0x379   :  { %1099 = vmatprep.mubr.f32.mxu1 %v899_v20 }
 0x37a   :  { %1100 = vmatmul.mubr.f32.vlgmr.msra.gmra.mrb[6].mxu1 %v898_v30 }
 0x40d   :  { %v1172_v21 = vpop.f32.mrb[4].mxu0 }
 0x40e   :  { %v1173_v22 = vpop.f32.mrb[5].mxu0 }
 0x40f   :  { %v1174_v23 = vadd.f32 %v1173_v22, %v1172_v21 }
 0x411   :  { %v1032_v25 = vadd.f32 %v1174_v23, %v964_v32 }
 0x44d   :  { %v1207_v24 = vpop.f32.mrb[6].mxu1 }
 0x44e   :  { %v1208_v13 = vpop.f32.mrb[7].mxu1 }
 0x44f   :  { %v1209_v19 = vadd.f32 %v1208_v13, %v1207_v24 }
 0x451   :  { %v1102_v52 = vadd.f32 %v1209_v19, %v1032_v25 }
 0x453   :  { %1128 = vst [vmem:[%s1898_s10] sm:$0x1] %v1102_v52 }
 0x454   :  { %1137 = vsyncpa [#allocation3], 1 }
 0x455   :  { %1138 = vsyncpa [#allocation5], 1 }
 0x456   :  { %1139 = vsyncpa [#allocation8], 1 }

</bundles_post_ra>
